<compile_context>
chip_gen: v7x
topology: tpu7x:2x2x1
jax: 0.10.0
libtpu: 0.0.40
codegen_flags: <defaults>
</compile_context>

<pallas_src>
import math

import jax
import jax.numpy as jnp
from jax import lax
from jax.experimental import pallas as pl
from jax.experimental.pallas import tpu as pltpu


# ----------------------------- model config ---------------------------------
B = 2            # batch
S = 8            # sequence length
INPUT_DIMS = 16
OUTPUT_DIMS = 16
HIDDEN_T_DIM = 16
HIDDEN = 32      # config.hidden_size
NUM_LAYERS = 2   # config.num_hidden_layers
NUM_HEADS = 4    # config.num_attention_heads
HEAD_DIM = HIDDEN // NUM_HEADS
INTERMEDIATE = 64  # config.intermediate_size
MAX_POS = 64       # config.max_position_embeddings
LN_EPS = 1e-12     # config.layer_norm_eps

_VMEM = pl.BlockSpec(memory_space=pltpu.MemorySpace.VMEM)

# input-ref layout of the fused kernel
_N_FIXED = 14    # x, t_sin, expand, time(4), up(4), pos, ln_g, ln_b
_N_LAYER = 12    # stacked-over-layers: qkv_w/b, o_w/b, ln1_g/b, i_w/b, f_w/b, ln2_g/b
_N_TAIL = 4      # down_w1, down_b1, down_w2, down_b2


# ----------------------------- fused Pallas kernel ---------------------------
def _fused_forward_kernel(
        x_ref, tsin_ref, expand_ref,
        tw1, tb1, tw2, tb2,
        uw1, ub1, uw2, ub2,
        pos_ref, lng, lnb,
        qkv_w_all, qkv_b_all, o_w_all, o_b_all,
        ln1_g_all, ln1_b_all, i_w_all, i_b_all,
        f_w_all, f_b_all, ln2_g_all, ln2_b_all,
        dw1, db1, dw2, db2,
        out_ref):
    f32 = jnp.float32

    def mm(a, w, b):
        return jnp.dot(a, w, preferred_element_type=f32) + b

    def layernorm(x, g, b):
        mu = jnp.mean(x, axis=-1, keepdims=True)
        xc = x - mu
        var = jnp.mean(xc * xc, axis=-1, keepdims=True)
        return xc * lax.rsqrt(var + LN_EPS) * g + b

    # ---- time_embed: Linear(t, 4t) -> SiLU -> Linear(4t, H) ----
    h_t = mm(tsin_ref[...], tw1[...], tb1[...])
    h_t = h_t * (1.0 / (1.0 + jnp.exp(-h_t)))            # SiLU
    emb_t = mm(h_t, tw2[...], tb2[...])                  # [B, H]

    # ---- input_up_proj: Linear(Din, H) -> Tanh -> Linear(H, H) ----
    u = jnp.tanh(mm(x_ref[...], uw1[...], ub1[...]))
    emb_x = mm(u, uw2[...], ub2[...])                    # [B*S, H]

    # ---- emb_inputs = pos_emb + emb_x + emb_t (per-batch broadcast) ----
    # emb_t [B,H] -> [B*S,H] via a 0/1 expansion matmul (MXU, no sub-sublane
    # slicing); pos is pre-tiled to [B*S, H].  dropout = identity (eval).
    emb_t_full = jnp.dot(expand_ref[...], emb_t, preferred_element_type=f32)
    h = layernorm(emb_x + pos_ref[...] + emb_t_full, lng[...], lnb[...])

    scale = 1.0 / math.sqrt(HEAD_DIM)
    inv_sqrt2 = 1.0 / math.sqrt(2.0)

    # preload tiny stacked bias / LN slabs once (each is [L, width])
    qkv_b = qkv_b_all[...]
    o_b = o_b_all[...]
    ln1_g = ln1_g_all[...]
    ln1_b = ln1_b_all[...]
    i_b = i_b_all[...]
    f_b = f_b_all[...]
    ln2_g = ln2_g_all[...]
    ln2_b = ln2_b_all[...]

    # ---- BertEncoder: post-LN transformer layers, no attention mask ----
    for l in range(NUM_LAYERS):
        rh = slice(l * HIDDEN, (l + 1) * HIDDEN)             # sublane-aligned
        ri = slice(l * INTERMEDIATE, (l + 1) * INTERMEDIATE)
        qkv_w = qkv_w_all[rh, :]
        o_w = o_w_all[rh, :]
        i_w = i_w_all[rh, :]
        f_w = f_w_all[ri, :]

        # fused QKV projection: one [B*S, H] x [H, 3H] matmul
        qkv = mm(h, qkv_w, qkv_b[l:l + 1, :])                 # [B*S, 3H]

        # attention over all (batch, head) pairs, unrolled in-kernel
        batch_out = []
        for b in range(B):
            r0 = b * S
            head_out = []
            for hh in range(NUM_HEADS):
                c0 = hh * HEAD_DIM
                qh = qkv[r0:r0 + S, c0:c0 + HEAD_DIM]
                kh = qkv[r0:r0 + S, HIDDEN + c0:HIDDEN + c0 + HEAD_DIM]
                vh = qkv[r0:r0 + S, 2 * HIDDEN + c0:2 * HIDDEN + c0 + HEAD_DIM]
                sc = lax.dot_general(qh, kh, (((1,), (1,)), ((), ())),
                                     preferred_element_type=f32) * scale
                m = jnp.max(sc, axis=-1, keepdims=True)
                p = jnp.exp(sc - m)
                p = p * pl.reciprocal(jnp.sum(p, axis=-1, keepdims=True),
                                      approx=True)
                head_out.append(jnp.dot(p, vh, preferred_element_type=f32))
            batch_out.append(jnp.concatenate(head_out, axis=-1))   # [S, H]
        ctx = jnp.concatenate(batch_out, axis=0)                   # [B*S, H]

        attn = mm(ctx, o_w, o_b[l:l + 1, :])
        h1 = layernorm(attn + h, ln1_g[l:l + 1, :], ln1_b[l:l + 1, :])
        inter = mm(h1, i_w, i_b[l:l + 1, :])
        inter = 0.5 * inter * (1.0 + lax.erf(inter * inv_sqrt2))   # exact GELU
        ffn = mm(inter, f_w, f_b[l:l + 1, :])
        h = layernorm(ffn + h1, ln2_g[l:l + 1, :], ln2_b[l:l + 1, :])

    # ---- output_down_proj: Linear(H, H) -> Tanh -> Linear(H, Dout) ----
    d1 = jnp.tanh(mm(h, dw1[...], db1[...]))
    out_ref[...] = mm(d1, dw2[...], db2[...]).astype(out_ref.dtype)


# ----------------------------- plain-JAX glue --------------------------------
def timestep_embedding(timesteps, dim, max_period=10000):
    half = dim // 2
    freqs = jnp.exp(
        -math.log(max_period) * jnp.arange(half, dtype=jnp.float32) / half)
    args = timesteps.astype(jnp.float32)[:, None] * freqs[None, :]
    emb = jnp.concatenate([jnp.cos(args), jnp.sin(args)], axis=-1)
    if dim % 2:
        emb = jnp.concatenate([emb, jnp.zeros_like(emb[:, :1])], axis=-1)
    return emb


def init_params(key):
    n_keys = 16 + NUM_LAYERS * 16
    keys = iter(jax.random.split(key, n_keys))

    def w(shape, scale=0.02):
        return jax.random.normal(next(keys), shape, jnp.float32) * scale

    params = {
        "time_w1": w((HIDDEN_T_DIM, 4 * HIDDEN_T_DIM)),
        "time_b1": jnp.zeros((4 * HIDDEN_T_DIM,), jnp.float32),
        "time_w2": w((4 * HIDDEN_T_DIM, HIDDEN)),
        "time_b2": jnp.zeros((HIDDEN,), jnp.float32),
        "up_w1": w((INPUT_DIMS, HIDDEN)),
        "up_b1": jnp.zeros((HIDDEN,), jnp.float32),
        "up_w2": w((HIDDEN, HIDDEN)),
        "up_b2": jnp.zeros((HIDDEN,), jnp.float32),
        "pos_emb": w((MAX_POS, HIDDEN)),
        "ln_g": jnp.ones((HIDDEN,), jnp.float32),
        "ln_b": jnp.zeros((HIDDEN,), jnp.float32),
        "down_w1": w((HIDDEN, HIDDEN)),
        "down_b1": jnp.zeros((HIDDEN,), jnp.float32),
        "down_w2": w((HIDDEN, OUTPUT_DIMS)),
        "down_b2": jnp.zeros((OUTPUT_DIMS,), jnp.float32),
        "layers": [],
    }
    for _ in range(NUM_LAYERS):
        params["layers"].append({
            "q_w": w((HIDDEN, HIDDEN)), "q_b": jnp.zeros((HIDDEN,), jnp.float32),
            "k_w": w((HIDDEN, HIDDEN)), "k_b": jnp.zeros((HIDDEN,), jnp.float32),
            "v_w": w((HIDDEN, HIDDEN)), "v_b": jnp.zeros((HIDDEN,), jnp.float32),
            "o_w": w((HIDDEN, HIDDEN)), "o_b": jnp.zeros((HIDDEN,), jnp.float32),
            "ln1_g": jnp.ones((HIDDEN,), jnp.float32),
            "ln1_b": jnp.zeros((HIDDEN,), jnp.float32),
            "i_w": w((HIDDEN, INTERMEDIATE)),
            "i_b": jnp.zeros((INTERMEDIATE,), jnp.float32),
            "f_w": w((INTERMEDIATE, HIDDEN)),
            "f_b": jnp.zeros((HIDDEN,), jnp.float32),
            "ln2_g": jnp.ones((HIDDEN,), jnp.float32),
            "ln2_b": jnp.zeros((HIDDEN,), jnp.float32),
        })
    return params


@jax.jit
def transformer_net_forward(params, x, timesteps):
    """Equivalent of TransformerNetModel.forward (eval mode: dropout = identity)."""
    b, s, d_in = x.shape
    assert (b, s, d_in) == (B, S, INPUT_DIMS)

    xf = x.astype(jnp.float32).reshape(b * s, d_in)
    t_sin = timestep_embedding(timesteps, HIDDEN_T_DIM)              # [B, t]
    expand = jnp.repeat(jnp.eye(b, dtype=jnp.float32), s, axis=0)    # [B*S, B]
    pos_full = jnp.tile(params["pos_emb"][:s], (b, 1))               # [B*S, H]

    def row(v):
        return v.reshape(1, -1)

    layers = params["layers"]
    # Stack per-layer params along the layer axis (static, sublane-aligned
    # slicing inside the kernel) -> fewer pallas_call operands / input DMAs.
    qkv_w_all = jnp.concatenate(
        [jnp.concatenate([l["q_w"], l["k_w"], l["v_w"]], axis=1) for l in layers],
        axis=0)                                                      # [L*H, 3H]
    qkv_b_all = jnp.stack(
        [jnp.concatenate([l["q_b"], l["k_b"], l["v_b"]], axis=0) for l in layers],
        axis=0)                                                      # [L, 3H]
    o_w_all = jnp.concatenate([l["o_w"] for l in layers], axis=0)    # [L*H, H]
    o_b_all = jnp.stack([l["o_b"] for l in layers], axis=0)          # [L, H]
    ln1_g_all = jnp.stack([l["ln1_g"] for l in layers], axis=0)
    ln1_b_all = jnp.stack([l["ln1_b"] for l in layers], axis=0)
    i_w_all = jnp.concatenate([l["i_w"] for l in layers], axis=0)    # [L*H, I]
    i_b_all = jnp.stack([l["i_b"] for l in layers], axis=0)          # [L, I]
    f_w_all = jnp.concatenate([l["f_w"] for l in layers], axis=0)    # [L*I, H]
    f_b_all = jnp.stack([l["f_b"] for l in layers], axis=0)          # [L, H]
    ln2_g_all = jnp.stack([l["ln2_g"] for l in layers], axis=0)
    ln2_b_all = jnp.stack([l["ln2_b"] for l in layers], axis=0)

    inputs = [
        xf, t_sin, expand,
        params["time_w1"], row(params["time_b1"]),
        params["time_w2"], row(params["time_b2"]),
        params["up_w1"], row(params["up_b1"]),
        params["up_w2"], row(params["up_b2"]),
        pos_full,
        row(params["ln_g"]), row(params["ln_b"]),
        qkv_w_all, qkv_b_all, o_w_all, o_b_all,
        ln1_g_all, ln1_b_all, i_w_all, i_b_all,
        f_w_all, f_b_all, ln2_g_all, ln2_b_all,
        params["down_w1"], row(params["down_b1"]),
        params["down_w2"], row(params["down_b2"]),
    ]
    assert len(inputs) == _N_FIXED + _N_LAYER + _N_TAIL

    out = pl.pallas_call(
        _fused_forward_kernel,
        out_shape=jax.ShapeDtypeStruct((b * s, OUTPUT_DIMS), jnp.float32),
        in_specs=[_VMEM] * len(inputs),
        out_specs=_VMEM,
        compiler_params=pltpu.CompilerParams(
            # all weights + activations << 1 MiB even with (8,128) padding;
            # explicit limit keeps Mosaic from conservative tiling/spilling.
            vmem_limit_bytes=16 * 1024 * 1024),
    )(*inputs)

    return out.reshape(b, s, OUTPUT_DIMS).astype(x.dtype)


# ----------------------------------- main ------------------------------------
if __name__ == "__main__":
    key = jax.random.PRNGKey(0)
    k_param, k_x, k_t = jax.random.split(key, 3)

    params = init_params(k_param)
    x = jax.random.normal(k_x, (B, S, INPUT_DIMS), jnp.float32)
    timesteps = jax.random.randint(k_t, (B,), 0, 1000).astype(jnp.float32)

    out = transformer_net_forward(params, x, timesteps)
    out = jax.block_until_ready(out)
    assert out.shape == (B, S, OUTPUT_DIMS), out.shape
    assert out.dtype == x.dtype
    print("KERNEL_OK")
</pallas_src>

<mosaic_0001>
module attributes {stable_mosaic.version = 11 : i64} {
  func.func @_fused_forward_kernel(%arg0: memref<16x16xf32, #tpu.memory_space<vmem>>, %arg1: memref<2x16xf32, #tpu.memory_space<vmem>>, %arg2: memref<16x2xf32, #tpu.memory_space<vmem>>, %arg3: memref<16x64xf32, #tpu.memory_space<vmem>>, %arg4: memref<1x64xf32, #tpu.memory_space<vmem>>, %arg5: memref<64x32xf32, #tpu.memory_space<vmem>>, %arg6: memref<1x32xf32, #tpu.memory_space<vmem>>, %arg7: memref<16x32xf32, #tpu.memory_space<vmem>>, %arg8: memref<1x32xf32, #tpu.memory_space<vmem>>, %arg9: memref<32x32xf32, #tpu.memory_space<vmem>>, %arg10: memref<1x32xf32, #tpu.memory_space<vmem>>, %arg11: memref<16x32xf32, #tpu.memory_space<vmem>>, %arg12: memref<1x32xf32, #tpu.memory_space<vmem>>, %arg13: memref<1x32xf32, #tpu.memory_space<vmem>>, %arg14: memref<64x96xf32, #tpu.memory_space<vmem>>, %arg15: memref<2x96xf32, #tpu.memory_space<vmem>>, %arg16: memref<64x32xf32, #tpu.memory_space<vmem>>, %arg17: memref<2x32xf32, #tpu.memory_space<vmem>>, %arg18: memref<2x32xf32, #tpu.memory_space<vmem>>, %arg19: memref<2x32xf32, #tpu.memory_space<vmem>>, %arg20: memref<64x64xf32, #tpu.memory_space<vmem>>, %arg21: memref<2x64xf32, #tpu.memory_space<vmem>>, %arg22: memref<128x32xf32, #tpu.memory_space<vmem>>, %arg23: memref<2x32xf32, #tpu.memory_space<vmem>>, %arg24: memref<2x32xf32, #tpu.memory_space<vmem>>, %arg25: memref<2x32xf32, #tpu.memory_space<vmem>>, %arg26: memref<32x32xf32, #tpu.memory_space<vmem>>, %arg27: memref<1x32xf32, #tpu.memory_space<vmem>>, %arg28: memref<32x16xf32, #tpu.memory_space<vmem>>, %arg29: memref<1x16xf32, #tpu.memory_space<vmem>>, %arg30: memref<16x16xf32, #tpu.memory_space<vmem>>) attributes {dimension_semantics = [], scalar_prefetch = 0 : i64, scratch_operands = 0 : i64, tpu.core_type = #tpu.core_type<tc>} {
    %c0 = arith.constant 0 : index
    %c0_0 = arith.constant 0 : index
    %0 = vector.load %arg1[%c0, %c0_0] : memref<2x16xf32, #tpu.memory_space<vmem>>, vector<2x16xf32>
    %c0_1 = arith.constant 0 : index
    %c0_2 = arith.constant 0 : index
    %1 = vector.load %arg3[%c0_1, %c0_2] : memref<16x64xf32, #tpu.memory_space<vmem>>, vector<16x64xf32>
    %c0_3 = arith.constant 0 : index
    %c0_4 = arith.constant 0 : index
    %2 = vector.load %arg4[%c0_3, %c0_4] : memref<1x64xf32, #tpu.memory_space<vmem>>, vector<1x64xf32>
    %cst = arith.constant dense<0.000000e+00> : vector<2x64xf32>
    %3 = tpu.matmul %0, %1, %cst {dimension_numbers = #tpu.dot_dimension_numbers<[1], [0], [0], [1], [0, 0, 1, 1], [], []>} : vector<2x16xf32>, vector<16x64xf32>, vector<2x64xf32> -> vector<2x64xf32>
    %4 = vector.broadcast %2 : vector<1x64xf32> to vector<2x64xf32>
    %5 = arith.addf %3, %4 : vector<2x64xf32>
    %cst_5 = arith.constant 0.000000e+00 : f32
    %6 = vector.broadcast %cst_5 : f32 to vector<2x64xf32>
    %7 = arith.subf %6, %5 : vector<2x64xf32>
    %8 = math.exp %7 : vector<2x64xf32>
    %cst_6 = arith.constant 1.000000e+00 : f32
    %9 = vector.broadcast %cst_6 : f32 to vector<2x64xf32>
    %10 = arith.addf %9, %8 : vector<2x64xf32>
    %cst_7 = arith.constant 1.000000e+00 : f32
    %11 = vector.broadcast %cst_7 : f32 to vector<2x64xf32>
    %12 = arith.divf %11, %10 : vector<2x64xf32>
    %13 = arith.mulf %5, %12 : vector<2x64xf32>
    %c0_8 = arith.constant 0 : index
    %c0_9 = arith.constant 0 : index
    %14 = vector.load %arg5[%c0_8, %c0_9] : memref<64x32xf32, #tpu.memory_space<vmem>>, vector<64x32xf32>
    %c0_10 = arith.constant 0 : index
    %c0_11 = arith.constant 0 : index
    %15 = vector.load %arg6[%c0_10, %c0_11] : memref<1x32xf32, #tpu.memory_space<vmem>>, vector<1x32xf32>
    %cst_12 = arith.constant dense<0.000000e+00> : vector<2x32xf32>
    %16 = tpu.matmul %13, %14, %cst_12 {dimension_numbers = #tpu.dot_dimension_numbers<[1], [0], [0], [1], [0, 0, 1, 1], [], []>} : vector<2x64xf32>, vector<64x32xf32>, vector<2x32xf32> -> vector<2x32xf32>
    %17 = vector.broadcast %15 : vector<1x32xf32> to vector<2x32xf32>
    %18 = arith.addf %16, %17 : vector<2x32xf32>
    %c0_13 = arith.constant 0 : index
    %c0_14 = arith.constant 0 : index
    %19 = vector.load %arg0[%c0_13, %c0_14] : memref<16x16xf32, #tpu.memory_space<vmem>>, vector<16x16xf32>
    %c0_15 = arith.constant 0 : index
    %c0_16 = arith.constant 0 : index
    %20 = vector.load %arg7[%c0_15, %c0_16] : memref<16x32xf32, #tpu.memory_space<vmem>>, vector<16x32xf32>
    %c0_17 = arith.constant 0 : index
    %c0_18 = arith.constant 0 : index
    %21 = vector.load %arg8[%c0_17, %c0_18] : memref<1x32xf32, #tpu.memory_space<vmem>>, vector<1x32xf32>
    %cst_19 = arith.constant dense<0.000000e+00> : vector<16x32xf32>
    %22 = tpu.matmul %19, %20, %cst_19 {dimension_numbers = #tpu.dot_dimension_numbers<[1], [0], [0], [1], [0, 0, 1, 1], [], []>} : vector<16x16xf32>, vector<16x32xf32>, vector<16x32xf32> -> vector<16x32xf32>
    %23 = vector.broadcast %21 : vector<1x32xf32> to vector<16x32xf32>
    %24 = arith.addf %22, %23 : vector<16x32xf32>
    %25 = math.tanh %24 : vector<16x32xf32>
    %c0_20 = arith.constant 0 : index
    %c0_21 = arith.constant 0 : index
    %26 = vector.load %arg9[%c0_20, %c0_21] : memref<32x32xf32, #tpu.memory_space<vmem>>, vector<32x32xf32>
    %c0_22 = arith.constant 0 : index
    %c0_23 = arith.constant 0 : index
    %27 = vector.load %arg10[%c0_22, %c0_23] : memref<1x32xf32, #tpu.memory_space<vmem>>, vector<1x32xf32>
    %cst_24 = arith.constant dense<0.000000e+00> : vector<16x32xf32>
    %28 = tpu.matmul %25, %26, %cst_24 {dimension_numbers = #tpu.dot_dimension_numbers<[1], [0], [0], [1], [0, 0, 1, 1], [], []>} : vector<16x32xf32>, vector<32x32xf32>, vector<16x32xf32> -> vector<16x32xf32>
    %29 = vector.broadcast %27 : vector<1x32xf32> to vector<16x32xf32>
    %30 = arith.addf %28, %29 : vector<16x32xf32>
    %c0_25 = arith.constant 0 : index
    %c0_26 = arith.constant 0 : index
    %31 = vector.load %arg2[%c0_25, %c0_26] : memref<16x2xf32, #tpu.memory_space<vmem>>, vector<16x2xf32>
    %cst_27 = arith.constant dense<0.000000e+00> : vector<16x32xf32>
    %32 = tpu.matmul %31, %18, %cst_27 {dimension_numbers = #tpu.dot_dimension_numbers<[1], [0], [0], [1], [0, 0, 1, 1], [], []>} : vector<16x2xf32>, vector<2x32xf32>, vector<16x32xf32> -> vector<16x32xf32>
    %c0_28 = arith.constant 0 : index
    %c0_29 = arith.constant 0 : index
    %33 = vector.load %arg11[%c0_28, %c0_29] : memref<16x32xf32, #tpu.memory_space<vmem>>, vector<16x32xf32>
    %34 = arith.addf %30, %33 : vector<16x32xf32>
    %35 = arith.addf %34, %32 : vector<16x32xf32>
    %c0_30 = arith.constant 0 : index
    %c0_31 = arith.constant 0 : index
    %36 = vector.load %arg12[%c0_30, %c0_31] : memref<1x32xf32, #tpu.memory_space<vmem>>, vector<1x32xf32>
    %c0_32 = arith.constant 0 : index
    %c0_33 = arith.constant 0 : index
    %37 = vector.load %arg13[%c0_32, %c0_33] : memref<1x32xf32, #tpu.memory_space<vmem>>, vector<1x32xf32>
    %cst_34 = arith.constant dense<0.000000e+00> : vector<16xf32>
    %38 = vector.multi_reduction <add>, %35, %cst_34 [1] : vector<16x32xf32> to vector<16xf32>
    %39 = vector.shape_cast %38 : vector<16xf32> to vector<16x1xf32>
    %cst_35 = arith.constant 3.200000e+01 : f32
    %40 = vector.broadcast %cst_35 : f32 to vector<16x1xf32>
    %41 = arith.divf %39, %40 : vector<16x1xf32>
    %42 = vector.broadcast %41 : vector<16x1xf32> to vector<16x32xf32>
    %43 = arith.subf %35, %42 : vector<16x32xf32>
    %44 = arith.mulf %43, %43 : vector<16x32xf32>
    %cst_36 = arith.constant dense<0.000000e+00> : vector<16xf32>
    %45 = vector.multi_reduction <add>, %44, %cst_36 [1] : vector<16x32xf32> to vector<16xf32>
    %46 = vector.shape_cast %45 : vector<16xf32> to vector<16x1xf32>
    %cst_37 = arith.constant 3.200000e+01 : f32
    %47 = vector.broadcast %cst_37 : f32 to vector<16x1xf32>
    %48 = arith.divf %46, %47 : vector<16x1xf32>
    %cst_38 = arith.constant 9.99999996E-13 : f32
    %49 = vector.broadcast %cst_38 : f32 to vector<16x1xf32>
    %50 = arith.addf %48, %49 : vector<16x1xf32>
    %51 = math.rsqrt %50 : vector<16x1xf32>
    %52 = vector.broadcast %51 : vector<16x1xf32> to vector<16x32xf32>
    %53 = arith.mulf %43, %52 : vector<16x32xf32>
    %54 = vector.broadcast %36 : vector<1x32xf32> to vector<16x32xf32>
    %55 = arith.mulf %53, %54 : vector<16x32xf32>
    %56 = vector.broadcast %37 : vector<1x32xf32> to vector<16x32xf32>
    %57 = arith.addf %55, %56 : vector<16x32xf32>
    %c0_39 = arith.constant 0 : index
    %c0_40 = arith.constant 0 : index
    %58 = vector.load %arg15[%c0_39, %c0_40] : memref<2x96xf32, #tpu.memory_space<vmem>>, vector<2x96xf32>
    %c0_41 = arith.constant 0 : index
    %c0_42 = arith.constant 0 : index
    %59 = vector.load %arg17[%c0_41, %c0_42] : memref<2x32xf32, #tpu.memory_space<vmem>>, vector<2x32xf32>
    %c0_43 = arith.constant 0 : index
    %c0_44 = arith.constant 0 : index
    %60 = vector.load %arg18[%c0_43, %c0_44] : memref<2x32xf32, #tpu.memory_space<vmem>>, vector<2x32xf32>
    %c0_45 = arith.constant 0 : index
    %c0_46 = arith.constant 0 : index
    %61 = vector.load %arg19[%c0_45, %c0_46] : memref<2x32xf32, #tpu.memory_space<vmem>>, vector<2x32xf32>
    %c0_47 = arith.constant 0 : index
    %c0_48 = arith.constant 0 : index
    %62 = vector.load %arg21[%c0_47, %c0_48] : memref<2x64xf32, #tpu.memory_space<vmem>>, vector<2x64xf32>
    %c0_49 = arith.constant 0 : index
    %c0_50 = arith.constant 0 : index
    %63 = vector.load %arg23[%c0_49, %c0_50] : memref<2x32xf32, #tpu.memory_space<vmem>>, vector<2x32xf32>
    %c0_51 = arith.constant 0 : index
    %c0_52 = arith.constant 0 : index
    %64 = vector.load %arg24[%c0_51, %c0_52] : memref<2x32xf32, #tpu.memory_space<vmem>>, vector<2x32xf32>
    %c0_53 = arith.constant 0 : index
    %c0_54 = arith.constant 0 : index
    %65 = vector.load %arg25[%c0_53, %c0_54] : memref<2x32xf32, #tpu.memory_space<vmem>>, vector<2x32xf32>
    %c0_55 = arith.constant 0 : index
    %c0_56 = arith.constant 0 : index
    %66 = vector.load %arg14[%c0_55, %c0_56] : memref<64x96xf32, #tpu.memory_space<vmem>>, vector<32x96xf32>
    %c0_57 = arith.constant 0 : index
    %c0_58 = arith.constant 0 : index
    %67 = vector.load %arg16[%c0_57, %c0_58] : memref<64x32xf32, #tpu.memory_space<vmem>>, vector<32x32xf32>
    %c0_59 = arith.constant 0 : index
    %c0_60 = arith.constant 0 : index
    %68 = vector.load %arg20[%c0_59, %c0_60] : memref<64x64xf32, #tpu.memory_space<vmem>>, vector<32x64xf32>
    %c0_61 = arith.constant 0 : index
    %c0_62 = arith.constant 0 : index
    %69 = vector.load %arg22[%c0_61, %c0_62] : memref<128x32xf32, #tpu.memory_space<vmem>>, vector<64x32xf32>
    %70 = vector.extract_strided_slice %58 {offsets = [0, 0], sizes = [1, 96], strides = [1, 1]} : vector<2x96xf32> to vector<1x96xf32>
    %cst_63 = arith.constant dense<0.000000e+00> : vector<16x96xf32>
    %71 = tpu.matmul %57, %66, %cst_63 {dimension_numbers = #tpu.dot_dimension_numbers<[1], [0], [0], [1], [0, 0, 1, 1], [], []>} : vector<16x32xf32>, vector<32x96xf32>, vector<16x96xf32> -> vector<16x96xf32>
    %72 = vector.broadcast %70 : vector<1x96xf32> to vector<16x96xf32>
    %73 = arith.addf %71, %72 : vector<16x96xf32>
    %74 = vector.extract_strided_slice %73 {offsets = [0, 0], sizes = [8, 8], strides = [1, 1]} : vector<16x96xf32> to vector<8x8xf32>
    %75 = vector.extract_strided_slice %73 {offsets = [0, 32], sizes = [8, 8], strides = [1, 1]} : vector<16x96xf32> to vector<8x8xf32>
    %76 = vector.extract_strided_slice %73 {offsets = [0, 64], sizes = [8, 8], strides = [1, 1]} : vector<16x96xf32> to vector<8x8xf32>
    %cst_64 = arith.constant dense<0.000000e+00> : vector<8x8xf32>
    %77 = tpu.matmul %74, %75, %cst_64 {dimension_numbers = #tpu.dot_dimension_numbers<[1], [1], [0], [0], [0, 0, 1, 0], [], []>} : vector<8x8xf32>, vector<8x8xf32>, vector<8x8xf32> -> vector<8x8xf32>
    %cst_65 = arith.constant 0.353553385 : f32
    %78 = vector.broadcast %cst_65 : f32 to vector<8x8xf32>
    %79 = arith.mulf %77, %78 : vector<8x8xf32>
    %cst_66 = arith.constant dense<0xFF800000> : vector<8xf32>
    %80 = vector.multi_reduction <maximumf>, %79, %cst_66 [1] : vector<8x8xf32> to vector<8xf32>
    %81 = vector.shape_cast %80 : vector<8xf32> to vector<8x1xf32>
    %82 = vector.broadcast %81 : vector<8x1xf32> to vector<8x8xf32>
    %83 = arith.subf %79, %82 : vector<8x8xf32>
    %84 = math.exp %83 : vector<8x8xf32>
    %cst_67 = arith.constant dense<0.000000e+00> : vector<8xf32>
    %85 = vector.multi_reduction <add>, %84, %cst_67 [1] : vector<8x8xf32> to vector<8xf32>
    %86 = vector.shape_cast %85 : vector<8xf32> to vector<8x1xf32>
    %87 = tpu.reciprocal %86 {approx = true} : vector<8x1xf32> -> vector<8x1xf32>
    %88 = vector.broadcast %87 : vector<8x1xf32> to vector<8x8xf32>
    %89 = arith.mulf %84, %88 : vector<8x8xf32>
    %cst_68 = arith.constant dense<0.000000e+00> : vector<8x8xf32>
    %90 = tpu.matmul %89, %76, %cst_68 {dimension_numbers = #tpu.dot_dimension_numbers<[1], [0], [0], [1], [0, 0, 1, 1], [], []>} : vector<8x8xf32>, vector<8x8xf32>, vector<8x8xf32> -> vector<8x8xf32>
    %91 = vector.extract_strided_slice %73 {offsets = [0, 8], sizes = [8, 8], strides = [1, 1]} : vector<16x96xf32> to vector<8x8xf32>
    %92 = vector.extract_strided_slice %73 {offsets = [0, 40], sizes = [8, 8], strides = [1, 1]} : vector<16x96xf32> to vector<8x8xf32>
    %93 = vector.extract_strided_slice %73 {offsets = [0, 72], sizes = [8, 8], strides = [1, 1]} : vector<16x96xf32> to vector<8x8xf32>
    %cst_69 = arith.constant dense<0.000000e+00> : vector<8x8xf32>
    %94 = tpu.matmul %91, %92, %cst_69 {dimension_numbers = #tpu.dot_dimension_numbers<[1], [1], [0], [0], [0, 0, 1, 0], [], []>} : vector<8x8xf32>, vector<8x8xf32>, vector<8x8xf32> -> vector<8x8xf32>
    %cst_70 = arith.constant 0.353553385 : f32
    %95 = vector.broadcast %cst_70 : f32 to vector<8x8xf32>
    %96 = arith.mulf %94, %95 : vector<8x8xf32>
    %cst_71 = arith.constant dense<0xFF800000> : vector<8xf32>
    %97 = vector.multi_reduction <maximumf>, %96, %cst_71 [1] : vector<8x8xf32> to vector<8xf32>
    %98 = vector.shape_cast %97 : vector<8xf32> to vector<8x1xf32>
    %99 = vector.broadcast %98 : vector<8x1xf32> to vector<8x8xf32>
    %100 = arith.subf %96, %99 : vector<8x8xf32>
    %101 = math.exp %100 : vector<8x8xf32>
    %cst_72 = arith.constant dense<0.000000e+00> : vector<8xf32>
    %102 = vector.multi_reduction <add>, %101, %cst_72 [1] : vector<8x8xf32> to vector<8xf32>
    %103 = vector.shape_cast %102 : vector<8xf32> to vector<8x1xf32>
    %104 = tpu.reciprocal %103 {approx = true} : vector<8x1xf32> -> vector<8x1xf32>
    %105 = vector.broadcast %104 : vector<8x1xf32> to vector<8x8xf32>
    %106 = arith.mulf %101, %105 : vector<8x8xf32>
    %cst_73 = arith.constant dense<0.000000e+00> : vector<8x8xf32>
    %107 = tpu.matmul %106, %93, %cst_73 {dimension_numbers = #tpu.dot_dimension_numbers<[1], [0], [0], [1], [0, 0, 1, 1], [], []>} : vector<8x8xf32>, vector<8x8xf32>, vector<8x8xf32> -> vector<8x8xf32>
    %108 = vector.extract_strided_slice %73 {offsets = [0, 16], sizes = [8, 8], strides = [1, 1]} : vector<16x96xf32> to vector<8x8xf32>
    %109 = vector.extract_strided_slice %73 {offsets = [0, 48], sizes = [8, 8], strides = [1, 1]} : vector<16x96xf32> to vector<8x8xf32>
    %110 = vector.extract_strided_slice %73 {offsets = [0, 80], sizes = [8, 8], strides = [1, 1]} : vector<16x96xf32> to vector<8x8xf32>
    %cst_74 = arith.constant dense<0.000000e+00> : vector<8x8xf32>
    %111 = tpu.matmul %108, %109, %cst_74 {dimension_numbers = #tpu.dot_dimension_numbers<[1], [1], [0], [0], [0, 0, 1, 0], [], []>} : vector<8x8xf32>, vector<8x8xf32>, vector<8x8xf32> -> vector<8x8xf32>
    %cst_75 = arith.constant 0.353553385 : f32
    %112 = vector.broadcast %cst_75 : f32 to vector<8x8xf32>
    %113 = arith.mulf %111, %112 : vector<8x8xf32>
    %cst_76 = arith.constant dense<0xFF800000> : vector<8xf32>
    %114 = vector.multi_reduction <maximumf>, %113, %cst_76 [1] : vector<8x8xf32> to vector<8xf32>
    %115 = vector.shape_cast %114 : vector<8xf32> to vector<8x1xf32>
    %116 = vector.broadcast %115 : vector<8x1xf32> to vector<8x8xf32>
    %117 = arith.subf %113, %116 : vector<8x8xf32>
    %118 = math.exp %117 : vector<8x8xf32>
    %cst_77 = arith.constant dense<0.000000e+00> : vector<8xf32>
    %119 = vector.multi_reduction <add>, %118, %cst_77 [1] : vector<8x8xf32> to vector<8xf32>
    %120 = vector.shape_cast %119 : vector<8xf32> to vector<8x1xf32>
    %121 = tpu.reciprocal %120 {approx = true} : vector<8x1xf32> -> vector<8x1xf32>
    %122 = vector.broadcast %121 : vector<8x1xf32> to vector<8x8xf32>
    %123 = arith.mulf %118, %122 : vector<8x8xf32>
    %cst_78 = arith.constant dense<0.000000e+00> : vector<8x8xf32>
    %124 = tpu.matmul %123, %110, %cst_78 {dimension_numbers = #tpu.dot_dimension_numbers<[1], [0], [0], [1], [0, 0, 1, 1], [], []>} : vector<8x8xf32>, vector<8x8xf32>, vector<8x8xf32> -> vector<8x8xf32>
    %125 = vector.extract_strided_slice %73 {offsets = [0, 24], sizes = [8, 8], strides = [1, 1]} : vector<16x96xf32> to vector<8x8xf32>
    %126 = vector.extract_strided_slice %73 {offsets = [0, 56], sizes = [8, 8], strides = [1, 1]} : vector<16x96xf32> to vector<8x8xf32>
    %127 = vector.extract_strided_slice %73 {offsets = [0, 88], sizes = [8, 8], strides = [1, 1]} : vector<16x96xf32> to vector<8x8xf32>
    %cst_79 = arith.constant dense<0.000000e+00> : vector<8x8xf32>
    %128 = tpu.matmul %125, %126, %cst_79 {dimension_numbers = #tpu.dot_dimension_numbers<[1], [1], [0], [0], [0, 0, 1, 0], [], []>} : vector<8x8xf32>, vector<8x8xf32>, vector<8x8xf32> -> vector<8x8xf32>
    %cst_80 = arith.constant 0.353553385 : f32
    %129 = vector.broadcast %cst_80 : f32 to vector<8x8xf32>
    %130 = arith.mulf %128, %129 : vector<8x8xf32>
    %cst_81 = arith.constant dense<0xFF800000> : vector<8xf32>
    %131 = vector.multi_reduction <maximumf>, %130, %cst_81 [1] : vector<8x8xf32> to vector<8xf32>
    %132 = vector.shape_cast %131 : vector<8xf32> to vector<8x1xf32>
    %133 = vector.broadcast %132 : vector<8x1xf32> to vector<8x8xf32>
    %134 = arith.subf %130, %133 : vector<8x8xf32>
    %135 = math.exp %134 : vector<8x8xf32>
    %cst_82 = arith.constant dense<0.000000e+00> : vector<8xf32>
    %136 = vector.multi_reduction <add>, %135, %cst_82 [1] : vector<8x8xf32> to vector<8xf32>
    %137 = vector.shape_cast %136 : vector<8xf32> to vector<8x1xf32>
    %138 = tpu.reciprocal %137 {approx = true} : vector<8x1xf32> -> vector<8x1xf32>
    %139 = vector.broadcast %138 : vector<8x1xf32> to vector<8x8xf32>
    %140 = arith.mulf %135, %139 : vector<8x8xf32>
    %cst_83 = arith.constant dense<0.000000e+00> : vector<8x8xf32>
    %141 = tpu.matmul %140, %127, %cst_83 {dimension_numbers = #tpu.dot_dimension_numbers<[1], [0], [0], [1], [0, 0, 1, 1], [], []>} : vector<8x8xf32>, vector<8x8xf32>, vector<8x8xf32> -> vector<8x8xf32>
    %142 = tpu.concatenate %90, %107, %124, %141 in 1 : vector<8x8xf32>, vector<8x8xf32>, vector<8x8xf32>, vector<8x8xf32> -> vector<8x32xf32>
    %143 = vector.extract_strided_slice %73 {offsets = [8, 0], sizes = [8, 8], strides = [1, 1]} : vector<16x96xf32> to vector<8x8xf32>
    %144 = vector.extract_strided_slice %73 {offsets = [8, 32], sizes = [8, 8], strides = [1, 1]} : vector<16x96xf32> to vector<8x8xf32>
    %145 = vector.extract_strided_slice %73 {offsets = [8, 64], sizes = [8, 8], strides = [1, 1]} : vector<16x96xf32> to vector<8x8xf32>
    %cst_84 = arith.constant dense<0.000000e+00> : vector<8x8xf32>
    %146 = tpu.matmul %143, %144, %cst_84 {dimension_numbers = #tpu.dot_dimension_numbers<[1], [1], [0], [0], [0, 0, 1, 0], [], []>} : vector<8x8xf32>, vector<8x8xf32>, vector<8x8xf32> -> vector<8x8xf32>
    %cst_85 = arith.constant 0.353553385 : f32
    %147 = vector.broadcast %cst_85 : f32 to vector<8x8xf32>
    %148 = arith.mulf %146, %147 : vector<8x8xf32>
    %cst_86 = arith.constant dense<0xFF800000> : vector<8xf32>
    %149 = vector.multi_reduction <maximumf>, %148, %cst_86 [1] : vector<8x8xf32> to vector<8xf32>
    %150 = vector.shape_cast %149 : vector<8xf32> to vector<8x1xf32>
    %151 = vector.broadcast %150 : vector<8x1xf32> to vector<8x8xf32>
    %152 = arith.subf %148, %151 : vector<8x8xf32>
    %153 = math.exp %152 : vector<8x8xf32>
    %cst_87 = arith.constant dense<0.000000e+00> : vector<8xf32>
    %154 = vector.multi_reduction <add>, %153, %cst_87 [1] : vector<8x8xf32> to vector<8xf32>
    %155 = vector.shape_cast %154 : vector<8xf32> to vector<8x1xf32>
    %156 = tpu.reciprocal %155 {approx = true} : vector<8x1xf32> -> vector<8x1xf32>
    %157 = vector.broadcast %156 : vector<8x1xf32> to vector<8x8xf32>
    %158 = arith.mulf %153, %157 : vector<8x8xf32>
    %cst_88 = arith.constant dense<0.000000e+00> : vector<8x8xf32>
    %159 = tpu.matmul %158, %145, %cst_88 {dimension_numbers = #tpu.dot_dimension_numbers<[1], [0], [0], [1], [0, 0, 1, 1], [], []>} : vector<8x8xf32>, vector<8x8xf32>, vector<8x8xf32> -> vector<8x8xf32>
    %160 = vector.extract_strided_slice %73 {offsets = [8, 8], sizes = [8, 8], strides = [1, 1]} : vector<16x96xf32> to vector<8x8xf32>
    %161 = vector.extract_strided_slice %73 {offsets = [8, 40], sizes = [8, 8], strides = [1, 1]} : vector<16x96xf32> to vector<8x8xf32>
    %162 = vector.extract_strided_slice %73 {offsets = [8, 72], sizes = [8, 8], strides = [1, 1]} : vector<16x96xf32> to vector<8x8xf32>
    %cst_89 = arith.constant dense<0.000000e+00> : vector<8x8xf32>
    %163 = tpu.matmul %160, %161, %cst_89 {dimension_numbers = #tpu.dot_dimension_numbers<[1], [1], [0], [0], [0, 0, 1, 0], [], []>} : vector<8x8xf32>, vector<8x8xf32>, vector<8x8xf32> -> vector<8x8xf32>
    %cst_90 = arith.constant 0.353553385 : f32
    %164 = vector.broadcast %cst_90 : f32 to vector<8x8xf32>
    %165 = arith.mulf %163, %164 : vector<8x8xf32>
    %cst_91 = arith.constant dense<0xFF800000> : vector<8xf32>
    %166 = vector.multi_reduction <maximumf>, %165, %cst_91 [1] : vector<8x8xf32> to vector<8xf32>
    %167 = vector.shape_cast %166 : vector<8xf32> to vector<8x1xf32>
    %168 = vector.broadcast %167 : vector<8x1xf32> to vector<8x8xf32>
    %169 = arith.subf %165, %168 : vector<8x8xf32>
    %170 = math.exp %169 : vector<8x8xf32>
    %cst_92 = arith.constant dense<0.000000e+00> : vector<8xf32>
    %171 = vector.multi_reduction <add>, %170, %cst_92 [1] : vector<8x8xf32> to vector<8xf32>
    %172 = vector.shape_cast %171 : vector<8xf32> to vector<8x1xf32>
    %173 = tpu.reciprocal %172 {approx = true} : vector<8x1xf32> -> vector<8x1xf32>
    %174 = vector.broadcast %173 : vector<8x1xf32> to vector<8x8xf32>
    %175 = arith.mulf %170, %174 : vector<8x8xf32>
    %cst_93 = arith.constant dense<0.000000e+00> : vector<8x8xf32>
    %176 = tpu.matmul %175, %162, %cst_93 {dimension_numbers = #tpu.dot_dimension_numbers<[1], [0], [0], [1], [0, 0, 1, 1], [], []>} : vector<8x8xf32>, vector<8x8xf32>, vector<8x8xf32> -> vector<8x8xf32>
    %177 = vector.extract_strided_slice %73 {offsets = [8, 16], sizes = [8, 8], strides = [1, 1]} : vector<16x96xf32> to vector<8x8xf32>
    %178 = vector.extract_strided_slice %73 {offsets = [8, 48], sizes = [8, 8], strides = [1, 1]} : vector<16x96xf32> to vector<8x8xf32>
    %179 = vector.extract_strided_slice %73 {offsets = [8, 80], sizes = [8, 8], strides = [1, 1]} : vector<16x96xf32> to vector<8x8xf32>
    %cst_94 = arith.constant dense<0.000000e+00> : vector<8x8xf32>
    %180 = tpu.matmul %177, %178, %cst_94 {dimension_numbers = #tpu.dot_dimension_numbers<[1], [1], [0], [0], [0, 0, 1, 0], [], []>} : vector<8x8xf32>, vector<8x8xf32>, vector<8x8xf32> -> vector<8x8xf32>
    %cst_95 = arith.constant 0.353553385 : f32
    %181 = vector.broadcast %cst_95 : f32 to vector<8x8xf32>
    %182 = arith.mulf %180, %181 : vector<8x8xf32>
    %cst_96 = arith.constant dense<0xFF800000> : vector<8xf32>
    %183 = vector.multi_reduction <maximumf>, %182, %cst_96 [1] : vector<8x8xf32> to vector<8xf32>
    %184 = vector.shape_cast %183 : vector<8xf32> to vector<8x1xf32>
    %185 = vector.broadcast %184 : vector<8x1xf32> to vector<8x8xf32>
    %186 = arith.subf %182, %185 : vector<8x8xf32>
    %187 = math.exp %186 : vector<8x8xf32>
    %cst_97 = arith.constant dense<0.000000e+00> : vector<8xf32>
    %188 = vector.multi_reduction <add>, %187, %cst_97 [1] : vector<8x8xf32> to vector<8xf32>
    %189 = vector.shape_cast %188 : vector<8xf32> to vector<8x1xf32>
    %190 = tpu.reciprocal %189 {approx = true} : vector<8x1xf32> -> vector<8x1xf32>
    %191 = vector.broadcast %190 : vector<8x1xf32> to vector<8x8xf32>
    %192 = arith.mulf %187, %191 : vector<8x8xf32>
    %cst_98 = arith.constant dense<0.000000e+00> : vector<8x8xf32>
    %193 = tpu.matmul %192, %179, %cst_98 {dimension_numbers = #tpu.dot_dimension_numbers<[1], [0], [0], [1], [0, 0, 1, 1], [], []>} : vector<8x8xf32>, vector<8x8xf32>, vector<8x8xf32> -> vector<8x8xf32>
    %194 = vector.extract_strided_slice %73 {offsets = [8, 24], sizes = [8, 8], strides = [1, 1]} : vector<16x96xf32> to vector<8x8xf32>
    %195 = vector.extract_strided_slice %73 {offsets = [8, 56], sizes = [8, 8], strides = [1, 1]} : vector<16x96xf32> to vector<8x8xf32>
    %196 = vector.extract_strided_slice %73 {offsets = [8, 88], sizes = [8, 8], strides = [1, 1]} : vector<16x96xf32> to vector<8x8xf32>
    %cst_99 = arith.constant dense<0.000000e+00> : vector<8x8xf32>
    %197 = tpu.matmul %194, %195, %cst_99 {dimension_numbers = #tpu.dot_dimension_numbers<[1], [1], [0], [0], [0, 0, 1, 0], [], []>} : vector<8x8xf32>, vector<8x8xf32>, vector<8x8xf32> -> vector<8x8xf32>
    %cst_100 = arith.constant 0.353553385 : f32
    %198 = vector.broadcast %cst_100 : f32 to vector<8x8xf32>
    %199 = arith.mulf %197, %198 : vector<8x8xf32>
    %cst_101 = arith.constant dense<0xFF800000> : vector<8xf32>
    %200 = vector.multi_reduction <maximumf>, %199, %cst_101 [1] : vector<8x8xf32> to vector<8xf32>
    %201 = vector.shape_cast %200 : vector<8xf32> to vector<8x1xf32>
    %202 = vector.broadcast %201 : vector<8x1xf32> to vector<8x8xf32>
    %203 = arith.subf %199, %202 : vector<8x8xf32>
    %204 = math.exp %203 : vector<8x8xf32>
    %cst_102 = arith.constant dense<0.000000e+00> : vector<8xf32>
    %205 = vector.multi_reduction <add>, %204, %cst_102 [1] : vector<8x8xf32> to vector<8xf32>
    %206 = vector.shape_cast %205 : vector<8xf32> to vector<8x1xf32>
    %207 = tpu.reciprocal %206 {approx = true} : vector<8x1xf32> -> vector<8x1xf32>
    %208 = vector.broadcast %207 : vector<8x1xf32> to vector<8x8xf32>
    %209 = arith.mulf %204, %208 : vector<8x8xf32>
    %cst_103 = arith.constant dense<0.000000e+00> : vector<8x8xf32>
    %210 = tpu.matmul %209, %196, %cst_103 {dimension_numbers = #tpu.dot_dimension_numbers<[1], [0], [0], [1], [0, 0, 1, 1], [], []>} : vector<8x8xf32>, vector<8x8xf32>, vector<8x8xf32> -> vector<8x8xf32>
    %211 = tpu.concatenate %159, %176, %193, %210 in 1 : vector<8x8xf32>, vector<8x8xf32>, vector<8x8xf32>, vector<8x8xf32> -> vector<8x32xf32>
    %212 = tpu.concatenate %142, %211 in 0 : vector<8x32xf32>, vector<8x32xf32> -> vector<16x32xf32>
    %213 = vector.extract_strided_slice %59 {offsets = [0, 0], sizes = [1, 32], strides = [1, 1]} : vector<2x32xf32> to vector<1x32xf32>
    %cst_104 = arith.constant dense<0.000000e+00> : vector<16x32xf32>
    %214 = tpu.matmul %212, %67, %cst_104 {dimension_numbers = #tpu.dot_dimension_numbers<[1], [0], [0], [1], [0, 0, 1, 1], [], []>} : vector<16x32xf32>, vector<32x32xf32>, vector<16x32xf32> -> vector<16x32xf32>
    %215 = vector.broadcast %213 : vector<1x32xf32> to vector<16x32xf32>
    %216 = arith.addf %214, %215 : vector<16x32xf32>
    %217 = arith.addf %216, %57 : vector<16x32xf32>
    %218 = vector.extract_strided_slice %60 {offsets = [0, 0], sizes = [1, 32], strides = [1, 1]} : vector<2x32xf32> to vector<1x32xf32>
    %219 = vector.extract_strided_slice %61 {offsets = [0, 0], sizes = [1, 32], strides = [1, 1]} : vector<2x32xf32> to vector<1x32xf32>
    %cst_105 = arith.constant dense<0.000000e+00> : vector<16xf32>
    %220 = vector.multi_reduction <add>, %217, %cst_105 [1] : vector<16x32xf32> to vector<16xf32>
    %221 = vector.shape_cast %220 : vector<16xf32> to vector<16x1xf32>
    %cst_106 = arith.constant 3.200000e+01 : f32
    %222 = vector.broadcast %cst_106 : f32 to vector<16x1xf32>
    %223 = arith.divf %221, %222 : vector<16x1xf32>
    %224 = vector.broadcast %223 : vector<16x1xf32> to vector<16x32xf32>
    %225 = arith.subf %217, %224 : vector<16x32xf32>
    %226 = arith.mulf %225, %225 : vector<16x32xf32>
    %cst_107 = arith.constant dense<0.000000e+00> : vector<16xf32>
    %227 = vector.multi_reduction <add>, %226, %cst_107 [1] : vector<16x32xf32> to vector<16xf32>
    %228 = vector.shape_cast %227 : vector<16xf32> to vector<16x1xf32>
    %cst_108 = arith.constant 3.200000e+01 : f32
    %229 = vector.broadcast %cst_108 : f32 to vector<16x1xf32>
    %230 = arith.divf %228, %229 : vector<16x1xf32>
    %cst_109 = arith.constant 9.99999996E-13 : f32
    %231 = vector.broadcast %cst_109 : f32 to vector<16x1xf32>
    %232 = arith.addf %230, %231 : vector<16x1xf32>
    %233 = math.rsqrt %232 : vector<16x1xf32>
    %234 = vector.broadcast %233 : vector<16x1xf32> to vector<16x32xf32>
    %235 = arith.mulf %225, %234 : vector<16x32xf32>
    %236 = vector.broadcast %218 : vector<1x32xf32> to vector<16x32xf32>
    %237 = arith.mulf %235, %236 : vector<16x32xf32>
    %238 = vector.broadcast %219 : vector<1x32xf32> to vector<16x32xf32>
    %239 = arith.addf %237, %238 : vector<16x32xf32>
    %240 = vector.extract_strided_slice %62 {offsets = [0, 0], sizes = [1, 64], strides = [1, 1]} : vector<2x64xf32> to vector<1x64xf32>
    %cst_110 = arith.constant dense<0.000000e+00> : vector<16x64xf32>
    %241 = tpu.matmul %239, %68, %cst_110 {dimension_numbers = #tpu.dot_dimension_numbers<[1], [0], [0], [1], [0, 0, 1, 1], [], []>} : vector<16x32xf32>, vector<32x64xf32>, vector<16x64xf32> -> vector<16x64xf32>
    %242 = vector.broadcast %240 : vector<1x64xf32> to vector<16x64xf32>
    %243 = arith.addf %241, %242 : vector<16x64xf32>
    %cst_111 = arith.constant 5.000000e-01 : f32
    %244 = vector.broadcast %cst_111 : f32 to vector<16x64xf32>
    %245 = arith.mulf %244, %243 : vector<16x64xf32>
    %cst_112 = arith.constant 0.707106769 : f32
    %246 = vector.broadcast %cst_112 : f32 to vector<16x64xf32>
    %247 = arith.mulf %243, %246 : vector<16x64xf32>
    %248 = math.erf %247 : vector<16x64xf32>
    %cst_113 = arith.constant 1.000000e+00 : f32
    %249 = vector.broadcast %cst_113 : f32 to vector<16x64xf32>
    %250 = arith.addf %249, %248 : vector<16x64xf32>
    %251 = arith.mulf %245, %250 : vector<16x64xf32>
    %252 = vector.extract_strided_slice %63 {offsets = [0, 0], sizes = [1, 32], strides = [1, 1]} : vector<2x32xf32> to vector<1x32xf32>
    %cst_114 = arith.constant dense<0.000000e+00> : vector<16x32xf32>
    %253 = tpu.matmul %251, %69, %cst_114 {dimension_numbers = #tpu.dot_dimension_numbers<[1], [0], [0], [1], [0, 0, 1, 1], [], []>} : vector<16x64xf32>, vector<64x32xf32>, vector<16x32xf32> -> vector<16x32xf32>
    %254 = vector.broadcast %252 : vector<1x32xf32> to vector<16x32xf32>
    %255 = arith.addf %253, %254 : vector<16x32xf32>
    %256 = arith.addf %255, %239 : vector<16x32xf32>
    %257 = vector.extract_strided_slice %64 {offsets = [0, 0], sizes = [1, 32], strides = [1, 1]} : vector<2x32xf32> to vector<1x32xf32>
    %258 = vector.extract_strided_slice %65 {offsets = [0, 0], sizes = [1, 32], strides = [1, 1]} : vector<2x32xf32> to vector<1x32xf32>
    %cst_115 = arith.constant dense<0.000000e+00> : vector<16xf32>
    %259 = vector.multi_reduction <add>, %256, %cst_115 [1] : vector<16x32xf32> to vector<16xf32>
    %260 = vector.shape_cast %259 : vector<16xf32> to vector<16x1xf32>
    %cst_116 = arith.constant 3.200000e+01 : f32
    %261 = vector.broadcast %cst_116 : f32 to vector<16x1xf32>
    %262 = arith.divf %260, %261 : vector<16x1xf32>
    %263 = vector.broadcast %262 : vector<16x1xf32> to vector<16x32xf32>
    %264 = arith.subf %256, %263 : vector<16x32xf32>
    %265 = arith.mulf %264, %264 : vector<16x32xf32>
    %cst_117 = arith.constant dense<0.000000e+00> : vector<16xf32>
    %266 = vector.multi_reduction <add>, %265, %cst_117 [1] : vector<16x32xf32> to vector<16xf32>
    %267 = vector.shape_cast %266 : vector<16xf32> to vector<16x1xf32>
    %cst_118 = arith.constant 3.200000e+01 : f32
    %268 = vector.broadcast %cst_118 : f32 to vector<16x1xf32>
    %269 = arith.divf %267, %268 : vector<16x1xf32>
    %cst_119 = arith.constant 9.99999996E-13 : f32
    %270 = vector.broadcast %cst_119 : f32 to vector<16x1xf32>
    %271 = arith.addf %269, %270 : vector<16x1xf32>
    %272 = math.rsqrt %271 : vector<16x1xf32>
    %273 = vector.broadcast %272 : vector<16x1xf32> to vector<16x32xf32>
    %274 = arith.mulf %264, %273 : vector<16x32xf32>
    %275 = vector.broadcast %257 : vector<1x32xf32> to vector<16x32xf32>
    %276 = arith.mulf %274, %275 : vector<16x32xf32>
    %277 = vector.broadcast %258 : vector<1x32xf32> to vector<16x32xf32>
    %278 = arith.addf %276, %277 : vector<16x32xf32>
    %c32 = arith.constant 32 : index
    %c0_120 = arith.constant 0 : index
    %279 = vector.load %arg14[%c32, %c0_120] : memref<64x96xf32, #tpu.memory_space<vmem>>, vector<32x96xf32>
    %c32_121 = arith.constant 32 : index
    %c0_122 = arith.constant 0 : index
    %280 = vector.load %arg16[%c32_121, %c0_122] : memref<64x32xf32, #tpu.memory_space<vmem>>, vector<32x32xf32>
    %c32_123 = arith.constant 32 : index
    %c0_124 = arith.constant 0 : index
    %281 = vector.load %arg20[%c32_123, %c0_124] : memref<64x64xf32, #tpu.memory_space<vmem>>, vector<32x64xf32>
    %c64 = arith.constant 64 : index
    %c0_125 = arith.constant 0 : index
    %282 = vector.load %arg22[%c64, %c0_125] : memref<128x32xf32, #tpu.memory_space<vmem>>, vector<64x32xf32>
    %283 = vector.extract_strided_slice %58 {offsets = [1, 0], sizes = [1, 96], strides = [1, 1]} : vector<2x96xf32> to vector<1x96xf32>
    %cst_126 = arith.constant dense<0.000000e+00> : vector<16x96xf32>
    %284 = tpu.matmul %278, %279, %cst_126 {dimension_numbers = #tpu.dot_dimension_numbers<[1], [0], [0], [1], [0, 0, 1, 1], [], []>} : vector<16x32xf32>, vector<32x96xf32>, vector<16x96xf32> -> vector<16x96xf32>
    %285 = vector.broadcast %283 : vector<1x96xf32> to vector<16x96xf32>
    %286 = arith.addf %284, %285 : vector<16x96xf32>
    %287 = vector.extract_strided_slice %286 {offsets = [0, 0], sizes = [8, 8], strides = [1, 1]} : vector<16x96xf32> to vector<8x8xf32>
    %288 = vector.extract_strided_slice %286 {offsets = [0, 32], sizes = [8, 8], strides = [1, 1]} : vector<16x96xf32> to vector<8x8xf32>
    %289 = vector.extract_strided_slice %286 {offsets = [0, 64], sizes = [8, 8], strides = [1, 1]} : vector<16x96xf32> to vector<8x8xf32>
    %cst_127 = arith.constant dense<0.000000e+00> : vector<8x8xf32>
    %290 = tpu.matmul %287, %288, %cst_127 {dimension_numbers = #tpu.dot_dimension_numbers<[1], [1], [0], [0], [0, 0, 1, 0], [], []>} : vector<8x8xf32>, vector<8x8xf32>, vector<8x8xf32> -> vector<8x8xf32>
    %cst_128 = arith.constant 0.353553385 : f32
    %291 = vector.broadcast %cst_128 : f32 to vector<8x8xf32>
    %292 = arith.mulf %290, %291 : vector<8x8xf32>
    %cst_129 = arith.constant dense<0xFF800000> : vector<8xf32>
    %293 = vector.multi_reduction <maximumf>, %292, %cst_129 [1] : vector<8x8xf32> to vector<8xf32>
    %294 = vector.shape_cast %293 : vector<8xf32> to vector<8x1xf32>
    %295 = vector.broadcast %294 : vector<8x1xf32> to vector<8x8xf32>
    %296 = arith.subf %292, %295 : vector<8x8xf32>
    %297 = math.exp %296 : vector<8x8xf32>
    %cst_130 = arith.constant dense<0.000000e+00> : vector<8xf32>
    %298 = vector.multi_reduction <add>, %297, %cst_130 [1] : vector<8x8xf32> to vector<8xf32>
    %299 = vector.shape_cast %298 : vector<8xf32> to vector<8x1xf32>
    %300 = tpu.reciprocal %299 {approx = true} : vector<8x1xf32> -> vector<8x1xf32>
    %301 = vector.broadcast %300 : vector<8x1xf32> to vector<8x8xf32>
    %302 = arith.mulf %297, %301 : vector<8x8xf32>
    %cst_131 = arith.constant dense<0.000000e+00> : vector<8x8xf32>
    %303 = tpu.matmul %302, %289, %cst_131 {dimension_numbers = #tpu.dot_dimension_numbers<[1], [0], [0], [1], [0, 0, 1, 1], [], []>} : vector<8x8xf32>, vector<8x8xf32>, vector<8x8xf32> -> vector<8x8xf32>
    %304 = vector.extract_strided_slice %286 {offsets = [0, 8], sizes = [8, 8], strides = [1, 1]} : vector<16x96xf32> to vector<8x8xf32>
    %305 = vector.extract_strided_slice %286 {offsets = [0, 40], sizes = [8, 8], strides = [1, 1]} : vector<16x96xf32> to vector<8x8xf32>
    %306 = vector.extract_strided_slice %286 {offsets = [0, 72], sizes = [8, 8], strides = [1, 1]} : vector<16x96xf32> to vector<8x8xf32>
    %cst_132 = arith.constant dense<0.000000e+00> : vector<8x8xf32>
    %307 = tpu.matmul %304, %305, %cst_132 {dimension_numbers = #tpu.dot_dimension_numbers<[1], [1], [0], [0], [0, 0, 1, 0], [], []>} : vector<8x8xf32>, vector<8x8xf32>, vector<8x8xf32> -> vector<8x8xf32>
    %cst_133 = arith.constant 0.353553385 : f32
    %308 = vector.broadcast %cst_133 : f32 to vector<8x8xf32>
    %309 = arith.mulf %307, %308 : vector<8x8xf32>
    %cst_134 = arith.constant dense<0xFF800000> : vector<8xf32>
    %310 = vector.multi_reduction <maximumf>, %309, %cst_134 [1] : vector<8x8xf32> to vector<8xf32>
    %311 = vector.shape_cast %310 : vector<8xf32> to vector<8x1xf32>
    %312 = vector.broadcast %311 : vector<8x1xf32> to vector<8x8xf32>
    %313 = arith.subf %309, %312 : vector<8x8xf32>
    %314 = math.exp %313 : vector<8x8xf32>
    %cst_135 = arith.constant dense<0.000000e+00> : vector<8xf32>
    %315 = vector.multi_reduction <add>, %314, %cst_135 [1] : vector<8x8xf32> to vector<8xf32>
    %316 = vector.shape_cast %315 : vector<8xf32> to vector<8x1xf32>
    %317 = tpu.reciprocal %316 {approx = true} : vector<8x1xf32> -> vector<8x1xf32>
    %318 = vector.broadcast %317 : vector<8x1xf32> to vector<8x8xf32>
    %319 = arith.mulf %314, %318 : vector<8x8xf32>
    %cst_136 = arith.constant dense<0.000000e+00> : vector<8x8xf32>
    %320 = tpu.matmul %319, %306, %cst_136 {dimension_numbers = #tpu.dot_dimension_numbers<[1], [0], [0], [1], [0, 0, 1, 1], [], []>} : vector<8x8xf32>, vector<8x8xf32>, vector<8x8xf32> -> vector<8x8xf32>
    %321 = vector.extract_strided_slice %286 {offsets = [0, 16], sizes = [8, 8], strides = [1, 1]} : vector<16x96xf32> to vector<8x8xf32>
    %322 = vector.extract_strided_slice %286 {offsets = [0, 48], sizes = [8, 8], strides = [1, 1]} : vector<16x96xf32> to vector<8x8xf32>
    %323 = vector.extract_strided_slice %286 {offsets = [0, 80], sizes = [8, 8], strides = [1, 1]} : vector<16x96xf32> to vector<8x8xf32>
    %cst_137 = arith.constant dense<0.000000e+00> : vector<8x8xf32>
    %324 = tpu.matmul %321, %322, %cst_137 {dimension_numbers = #tpu.dot_dimension_numbers<[1], [1], [0], [0], [0, 0, 1, 0], [], []>} : vector<8x8xf32>, vector<8x8xf32>, vector<8x8xf32> -> vector<8x8xf32>
    %cst_138 = arith.constant 0.353553385 : f32
    %325 = vector.broadcast %cst_138 : f32 to vector<8x8xf32>
    %326 = arith.mulf %324, %325 : vector<8x8xf32>
    %cst_139 = arith.constant dense<0xFF800000> : vector<8xf32>
    %327 = vector.multi_reduction <maximumf>, %326, %cst_139 [1] : vector<8x8xf32> to vector<8xf32>
    %328 = vector.shape_cast %327 : vector<8xf32> to vector<8x1xf32>
    %329 = vector.broadcast %328 : vector<8x1xf32> to vector<8x8xf32>
    %330 = arith.subf %326, %329 : vector<8x8xf32>
    %331 = math.exp %330 : vector<8x8xf32>
    %cst_140 = arith.constant dense<0.000000e+00> : vector<8xf32>
    %332 = vector.multi_reduction <add>, %331, %cst_140 [1] : vector<8x8xf32> to vector<8xf32>
    %333 = vector.shape_cast %332 : vector<8xf32> to vector<8x1xf32>
    %334 = tpu.reciprocal %333 {approx = true} : vector<8x1xf32> -> vector<8x1xf32>
    %335 = vector.broadcast %334 : vector<8x1xf32> to vector<8x8xf32>
    %336 = arith.mulf %331, %335 : vector<8x8xf32>
    %cst_141 = arith.constant dense<0.000000e+00> : vector<8x8xf32>
    %337 = tpu.matmul %336, %323, %cst_141 {dimension_numbers = #tpu.dot_dimension_numbers<[1], [0], [0], [1], [0, 0, 1, 1], [], []>} : vector<8x8xf32>, vector<8x8xf32>, vector<8x8xf32> -> vector<8x8xf32>
    %338 = vector.extract_strided_slice %286 {offsets = [0, 24], sizes = [8, 8], strides = [1, 1]} : vector<16x96xf32> to vector<8x8xf32>
    %339 = vector.extract_strided_slice %286 {offsets = [0, 56], sizes = [8, 8], strides = [1, 1]} : vector<16x96xf32> to vector<8x8xf32>
    %340 = vector.extract_strided_slice %286 {offsets = [0, 88], sizes = [8, 8], strides = [1, 1]} : vector<16x96xf32> to vector<8x8xf32>
    %cst_142 = arith.constant dense<0.000000e+00> : vector<8x8xf32>
    %341 = tpu.matmul %338, %339, %cst_142 {dimension_numbers = #tpu.dot_dimension_numbers<[1], [1], [0], [0], [0, 0, 1, 0], [], []>} : vector<8x8xf32>, vector<8x8xf32>, vector<8x8xf32> -> vector<8x8xf32>
    %cst_143 = arith.constant 0.353553385 : f32
    %342 = vector.broadcast %cst_143 : f32 to vector<8x8xf32>
    %343 = arith.mulf %341, %342 : vector<8x8xf32>
    %cst_144 = arith.constant dense<0xFF800000> : vector<8xf32>
    %344 = vector.multi_reduction <maximumf>, %343, %cst_144 [1] : vector<8x8xf32> to vector<8xf32>
    %345 = vector.shape_cast %344 : vector<8xf32> to vector<8x1xf32>
    %346 = vector.broadcast %345 : vector<8x1xf32> to vector<8x8xf32>
    %347 = arith.subf %343, %346 : vector<8x8xf32>
    %348 = math.exp %347 : vector<8x8xf32>
    %cst_145 = arith.constant dense<0.000000e+00> : vector<8xf32>
    %349 = vector.multi_reduction <add>, %348, %cst_145 [1] : vector<8x8xf32> to vector<8xf32>
    %350 = vector.shape_cast %349 : vector<8xf32> to vector<8x1xf32>
    %351 = tpu.reciprocal %350 {approx = true} : vector<8x1xf32> -> vector<8x1xf32>
    %352 = vector.broadcast %351 : vector<8x1xf32> to vector<8x8xf32>
    %353 = arith.mulf %348, %352 : vector<8x8xf32>
    %cst_146 = arith.constant dense<0.000000e+00> : vector<8x8xf32>
    %354 = tpu.matmul %353, %340, %cst_146 {dimension_numbers = #tpu.dot_dimension_numbers<[1], [0], [0], [1], [0, 0, 1, 1], [], []>} : vector<8x8xf32>, vector<8x8xf32>, vector<8x8xf32> -> vector<8x8xf32>
    %355 = tpu.concatenate %303, %320, %337, %354 in 1 : vector<8x8xf32>, vector<8x8xf32>, vector<8x8xf32>, vector<8x8xf32> -> vector<8x32xf32>
    %356 = vector.extract_strided_slice %286 {offsets = [8, 0], sizes = [8, 8], strides = [1, 1]} : vector<16x96xf32> to vector<8x8xf32>
    %357 = vector.extract_strided_slice %286 {offsets = [8, 32], sizes = [8, 8], strides = [1, 1]} : vector<16x96xf32> to vector<8x8xf32>
    %358 = vector.extract_strided_slice %286 {offsets = [8, 64], sizes = [8, 8], strides = [1, 1]} : vector<16x96xf32> to vector<8x8xf32>
    %cst_147 = arith.constant dense<0.000000e+00> : vector<8x8xf32>
    %359 = tpu.matmul %356, %357, %cst_147 {dimension_numbers = #tpu.dot_dimension_numbers<[1], [1], [0], [0], [0, 0, 1, 0], [], []>} : vector<8x8xf32>, vector<8x8xf32>, vector<8x8xf32> -> vector<8x8xf32>
    %cst_148 = arith.constant 0.353553385 : f32
    %360 = vector.broadcast %cst_148 : f32 to vector<8x8xf32>
    %361 = arith.mulf %359, %360 : vector<8x8xf32>
    %cst_149 = arith.constant dense<0xFF800000> : vector<8xf32>
    %362 = vector.multi_reduction <maximumf>, %361, %cst_149 [1] : vector<8x8xf32> to vector<8xf32>
    %363 = vector.shape_cast %362 : vector<8xf32> to vector<8x1xf32>
    %364 = vector.broadcast %363 : vector<8x1xf32> to vector<8x8xf32>
    %365 = arith.subf %361, %364 : vector<8x8xf32>
    %366 = math.exp %365 : vector<8x8xf32>
    %cst_150 = arith.constant dense<0.000000e+00> : vector<8xf32>
    %367 = vector.multi_reduction <add>, %366, %cst_150 [1] : vector<8x8xf32> to vector<8xf32>
    %368 = vector.shape_cast %367 : vector<8xf32> to vector<8x1xf32>
    %369 = tpu.reciprocal %368 {approx = true} : vector<8x1xf32> -> vector<8x1xf32>
    %370 = vector.broadcast %369 : vector<8x1xf32> to vector<8x8xf32>
    %371 = arith.mulf %366, %370 : vector<8x8xf32>
    %cst_151 = arith.constant dense<0.000000e+00> : vector<8x8xf32>
    %372 = tpu.matmul %371, %358, %cst_151 {dimension_numbers = #tpu.dot_dimension_numbers<[1], [0], [0], [1], [0, 0, 1, 1], [], []>} : vector<8x8xf32>, vector<8x8xf32>, vector<8x8xf32> -> vector<8x8xf32>
    %373 = vector.extract_strided_slice %286 {offsets = [8, 8], sizes = [8, 8], strides = [1, 1]} : vector<16x96xf32> to vector<8x8xf32>
    %374 = vector.extract_strided_slice %286 {offsets = [8, 40], sizes = [8, 8], strides = [1, 1]} : vector<16x96xf32> to vector<8x8xf32>
    %375 = vector.extract_strided_slice %286 {offsets = [8, 72], sizes = [8, 8], strides = [1, 1]} : vector<16x96xf32> to vector<8x8xf32>
    %cst_152 = arith.constant dense<0.000000e+00> : vector<8x8xf32>
    %376 = tpu.matmul %373, %374, %cst_152 {dimension_numbers = #tpu.dot_dimension_numbers<[1], [1], [0], [0], [0, 0, 1, 0], [], []>} : vector<8x8xf32>, vector<8x8xf32>, vector<8x8xf32> -> vector<8x8xf32>
    %cst_153 = arith.constant 0.353553385 : f32
    %377 = vector.broadcast %cst_153 : f32 to vector<8x8xf32>
    %378 = arith.mulf %376, %377 : vector<8x8xf32>
    %cst_154 = arith.constant dense<0xFF800000> : vector<8xf32>
    %379 = vector.multi_reduction <maximumf>, %378, %cst_154 [1] : vector<8x8xf32> to vector<8xf32>
    %380 = vector.shape_cast %379 : vector<8xf32> to vector<8x1xf32>
    %381 = vector.broadcast %380 : vector<8x1xf32> to vector<8x8xf32>
    %382 = arith.subf %378, %381 : vector<8x8xf32>
    %383 = math.exp %382 : vector<8x8xf32>
    %cst_155 = arith.constant dense<0.000000e+00> : vector<8xf32>
    %384 = vector.multi_reduction <add>, %383, %cst_155 [1] : vector<8x8xf32> to vector<8xf32>
    %385 = vector.shape_cast %384 : vector<8xf32> to vector<8x1xf32>
    %386 = tpu.reciprocal %385 {approx = true} : vector<8x1xf32> -> vector<8x1xf32>
    %387 = vector.broadcast %386 : vector<8x1xf32> to vector<8x8xf32>
    %388 = arith.mulf %383, %387 : vector<8x8xf32>
    %cst_156 = arith.constant dense<0.000000e+00> : vector<8x8xf32>
    %389 = tpu.matmul %388, %375, %cst_156 {dimension_numbers = #tpu.dot_dimension_numbers<[1], [0], [0], [1], [0, 0, 1, 1], [], []>} : vector<8x8xf32>, vector<8x8xf32>, vector<8x8xf32> -> vector<8x8xf32>
    %390 = vector.extract_strided_slice %286 {offsets = [8, 16], sizes = [8, 8], strides = [1, 1]} : vector<16x96xf32> to vector<8x8xf32>
    %391 = vector.extract_strided_slice %286 {offsets = [8, 48], sizes = [8, 8], strides = [1, 1]} : vector<16x96xf32> to vector<8x8xf32>
    %392 = vector.extract_strided_slice %286 {offsets = [8, 80], sizes = [8, 8], strides = [1, 1]} : vector<16x96xf32> to vector<8x8xf32>
    %cst_157 = arith.constant dense<0.000000e+00> : vector<8x8xf32>
    %393 = tpu.matmul %390, %391, %cst_157 {dimension_numbers = #tpu.dot_dimension_numbers<[1], [1], [0], [0], [0, 0, 1, 0], [], []>} : vector<8x8xf32>, vector<8x8xf32>, vector<8x8xf32> -> vector<8x8xf32>
    %cst_158 = arith.constant 0.353553385 : f32
    %394 = vector.broadcast %cst_158 : f32 to vector<8x8xf32>
    %395 = arith.mulf %393, %394 : vector<8x8xf32>
    %cst_159 = arith.constant dense<0xFF800000> : vector<8xf32>
    %396 = vector.multi_reduction <maximumf>, %395, %cst_159 [1] : vector<8x8xf32> to vector<8xf32>
    %397 = vector.shape_cast %396 : vector<8xf32> to vector<8x1xf32>
    %398 = vector.broadcast %397 : vector<8x1xf32> to vector<8x8xf32>
    %399 = arith.subf %395, %398 : vector<8x8xf32>
    %400 = math.exp %399 : vector<8x8xf32>
    %cst_160 = arith.constant dense<0.000000e+00> : vector<8xf32>
    %401 = vector.multi_reduction <add>, %400, %cst_160 [1] : vector<8x8xf32> to vector<8xf32>
    %402 = vector.shape_cast %401 : vector<8xf32> to vector<8x1xf32>
    %403 = tpu.reciprocal %402 {approx = true} : vector<8x1xf32> -> vector<8x1xf32>
    %404 = vector.broadcast %403 : vector<8x1xf32> to vector<8x8xf32>
    %405 = arith.mulf %400, %404 : vector<8x8xf32>
    %cst_161 = arith.constant dense<0.000000e+00> : vector<8x8xf32>
    %406 = tpu.matmul %405, %392, %cst_161 {dimension_numbers = #tpu.dot_dimension_numbers<[1], [0], [0], [1], [0, 0, 1, 1], [], []>} : vector<8x8xf32>, vector<8x8xf32>, vector<8x8xf32> -> vector<8x8xf32>
    %407 = vector.extract_strided_slice %286 {offsets = [8, 24], sizes = [8, 8], strides = [1, 1]} : vector<16x96xf32> to vector<8x8xf32>
    %408 = vector.extract_strided_slice %286 {offsets = [8, 56], sizes = [8, 8], strides = [1, 1]} : vector<16x96xf32> to vector<8x8xf32>
    %409 = vector.extract_strided_slice %286 {offsets = [8, 88], sizes = [8, 8], strides = [1, 1]} : vector<16x96xf32> to vector<8x8xf32>
    %cst_162 = arith.constant dense<0.000000e+00> : vector<8x8xf32>
    %410 = tpu.matmul %407, %408, %cst_162 {dimension_numbers = #tpu.dot_dimension_numbers<[1], [1], [0], [0], [0, 0, 1, 0], [], []>} : vector<8x8xf32>, vector<8x8xf32>, vector<8x8xf32> -> vector<8x8xf32>
    %cst_163 = arith.constant 0.353553385 : f32
    %411 = vector.broadcast %cst_163 : f32 to vector<8x8xf32>
    %412 = arith.mulf %410, %411 : vector<8x8xf32>
    %cst_164 = arith.constant dense<0xFF800000> : vector<8xf32>
    %413 = vector.multi_reduction <maximumf>, %412, %cst_164 [1] : vector<8x8xf32> to vector<8xf32>
    %414 = vector.shape_cast %413 : vector<8xf32> to vector<8x1xf32>
    %415 = vector.broadcast %414 : vector<8x1xf32> to vector<8x8xf32>
    %416 = arith.subf %412, %415 : vector<8x8xf32>
    %417 = math.exp %416 : vector<8x8xf32>
    %cst_165 = arith.constant dense<0.000000e+00> : vector<8xf32>
    %418 = vector.multi_reduction <add>, %417, %cst_165 [1] : vector<8x8xf32> to vector<8xf32>
    %419 = vector.shape_cast %418 : vector<8xf32> to vector<8x1xf32>
    %420 = tpu.reciprocal %419 {approx = true} : vector<8x1xf32> -> vector<8x1xf32>
    %421 = vector.broadcast %420 : vector<8x1xf32> to vector<8x8xf32>
    %422 = arith.mulf %417, %421 : vector<8x8xf32>
    %cst_166 = arith.constant dense<0.000000e+00> : vector<8x8xf32>
    %423 = tpu.matmul %422, %409, %cst_166 {dimension_numbers = #tpu.dot_dimension_numbers<[1], [0], [0], [1], [0, 0, 1, 1], [], []>} : vector<8x8xf32>, vector<8x8xf32>, vector<8x8xf32> -> vector<8x8xf32>
    %424 = tpu.concatenate %372, %389, %406, %423 in 1 : vector<8x8xf32>, vector<8x8xf32>, vector<8x8xf32>, vector<8x8xf32> -> vector<8x32xf32>
    %425 = tpu.concatenate %355, %424 in 0 : vector<8x32xf32>, vector<8x32xf32> -> vector<16x32xf32>
    %426 = vector.extract_strided_slice %59 {offsets = [1, 0], sizes = [1, 32], strides = [1, 1]} : vector<2x32xf32> to vector<1x32xf32>
    %cst_167 = arith.constant dense<0.000000e+00> : vector<16x32xf32>
    %427 = tpu.matmul %425, %280, %cst_167 {dimension_numbers = #tpu.dot_dimension_numbers<[1], [0], [0], [1], [0, 0, 1, 1], [], []>} : vector<16x32xf32>, vector<32x32xf32>, vector<16x32xf32> -> vector<16x32xf32>
    %428 = vector.broadcast %426 : vector<1x32xf32> to vector<16x32xf32>
    %429 = arith.addf %427, %428 : vector<16x32xf32>
    %430 = arith.addf %429, %278 : vector<16x32xf32>
    %431 = vector.extract_strided_slice %60 {offsets = [1, 0], sizes = [1, 32], strides = [1, 1]} : vector<2x32xf32> to vector<1x32xf32>
    %432 = vector.extract_strided_slice %61 {offsets = [1, 0], sizes = [1, 32], strides = [1, 1]} : vector<2x32xf32> to vector<1x32xf32>
    %cst_168 = arith.constant dense<0.000000e+00> : vector<16xf32>
    %433 = vector.multi_reduction <add>, %430, %cst_168 [1] : vector<16x32xf32> to vector<16xf32>
    %434 = vector.shape_cast %433 : vector<16xf32> to vector<16x1xf32>
    %cst_169 = arith.constant 3.200000e+01 : f32
    %435 = vector.broadcast %cst_169 : f32 to vector<16x1xf32>
    %436 = arith.divf %434, %435 : vector<16x1xf32>
    %437 = vector.broadcast %436 : vector<16x1xf32> to vector<16x32xf32>
    %438 = arith.subf %430, %437 : vector<16x32xf32>
    %439 = arith.mulf %438, %438 : vector<16x32xf32>
    %cst_170 = arith.constant dense<0.000000e+00> : vector<16xf32>
    %440 = vector.multi_reduction <add>, %439, %cst_170 [1] : vector<16x32xf32> to vector<16xf32>
    %441 = vector.shape_cast %440 : vector<16xf32> to vector<16x1xf32>
    %cst_171 = arith.constant 3.200000e+01 : f32
    %442 = vector.broadcast %cst_171 : f32 to vector<16x1xf32>
    %443 = arith.divf %441, %442 : vector<16x1xf32>
    %cst_172 = arith.constant 9.99999996E-13 : f32
    %444 = vector.broadcast %cst_172 : f32 to vector<16x1xf32>
    %445 = arith.addf %443, %444 : vector<16x1xf32>
    %446 = math.rsqrt %445 : vector<16x1xf32>
    %447 = vector.broadcast %446 : vector<16x1xf32> to vector<16x32xf32>
    %448 = arith.mulf %438, %447 : vector<16x32xf32>
    %449 = vector.broadcast %431 : vector<1x32xf32> to vector<16x32xf32>
    %450 = arith.mulf %448, %449 : vector<16x32xf32>
    %451 = vector.broadcast %432 : vector<1x32xf32> to vector<16x32xf32>
    %452 = arith.addf %450, %451 : vector<16x32xf32>
    %453 = vector.extract_strided_slice %62 {offsets = [1, 0], sizes = [1, 64], strides = [1, 1]} : vector<2x64xf32> to vector<1x64xf32>
    %cst_173 = arith.constant dense<0.000000e+00> : vector<16x64xf32>
    %454 = tpu.matmul %452, %281, %cst_173 {dimension_numbers = #tpu.dot_dimension_numbers<[1], [0], [0], [1], [0, 0, 1, 1], [], []>} : vector<16x32xf32>, vector<32x64xf32>, vector<16x64xf32> -> vector<16x64xf32>
    %455 = vector.broadcast %453 : vector<1x64xf32> to vector<16x64xf32>
    %456 = arith.addf %454, %455 : vector<16x64xf32>
    %cst_174 = arith.constant 5.000000e-01 : f32
    %457 = vector.broadcast %cst_174 : f32 to vector<16x64xf32>
    %458 = arith.mulf %457, %456 : vector<16x64xf32>
    %cst_175 = arith.constant 0.707106769 : f32
    %459 = vector.broadcast %cst_175 : f32 to vector<16x64xf32>
    %460 = arith.mulf %456, %459 : vector<16x64xf32>
    %461 = math.erf %460 : vector<16x64xf32>
    %cst_176 = arith.constant 1.000000e+00 : f32
    %462 = vector.broadcast %cst_176 : f32 to vector<16x64xf32>
    %463 = arith.addf %462, %461 : vector<16x64xf32>
    %464 = arith.mulf %458, %463 : vector<16x64xf32>
    %465 = vector.extract_strided_slice %63 {offsets = [1, 0], sizes = [1, 32], strides = [1, 1]} : vector<2x32xf32> to vector<1x32xf32>
    %cst_177 = arith.constant dense<0.000000e+00> : vector<16x32xf32>
    %466 = tpu.matmul %464, %282, %cst_177 {dimension_numbers = #tpu.dot_dimension_numbers<[1], [0], [0], [1], [0, 0, 1, 1], [], []>} : vector<16x64xf32>, vector<64x32xf32>, vector<16x32xf32> -> vector<16x32xf32>
    %467 = vector.broadcast %465 : vector<1x32xf32> to vector<16x32xf32>
    %468 = arith.addf %466, %467 : vector<16x32xf32>
    %469 = arith.addf %468, %452 : vector<16x32xf32>
    %470 = vector.extract_strided_slice %64 {offsets = [1, 0], sizes = [1, 32], strides = [1, 1]} : vector<2x32xf32> to vector<1x32xf32>
    %471 = vector.extract_strided_slice %65 {offsets = [1, 0], sizes = [1, 32], strides = [1, 1]} : vector<2x32xf32> to vector<1x32xf32>
    %cst_178 = arith.constant dense<0.000000e+00> : vector<16xf32>
    %472 = vector.multi_reduction <add>, %469, %cst_178 [1] : vector<16x32xf32> to vector<16xf32>
    %473 = vector.shape_cast %472 : vector<16xf32> to vector<16x1xf32>
    %cst_179 = arith.constant 3.200000e+01 : f32
    %474 = vector.broadcast %cst_179 : f32 to vector<16x1xf32>
    %475 = arith.divf %473, %474 : vector<16x1xf32>
    %476 = vector.broadcast %475 : vector<16x1xf32> to vector<16x32xf32>
    %477 = arith.subf %469, %476 : vector<16x32xf32>
    %478 = arith.mulf %477, %477 : vector<16x32xf32>
    %cst_180 = arith.constant dense<0.000000e+00> : vector<16xf32>
    %479 = vector.multi_reduction <add>, %478, %cst_180 [1] : vector<16x32xf32> to vector<16xf32>
    %480 = vector.shape_cast %479 : vector<16xf32> to vector<16x1xf32>
    %cst_181 = arith.constant 3.200000e+01 : f32
    %481 = vector.broadcast %cst_181 : f32 to vector<16x1xf32>
    %482 = arith.divf %480, %481 : vector<16x1xf32>
    %cst_182 = arith.constant 9.99999996E-13 : f32
    %483 = vector.broadcast %cst_182 : f32 to vector<16x1xf32>
    %484 = arith.addf %482, %483 : vector<16x1xf32>
    %485 = math.rsqrt %484 : vector<16x1xf32>
    %486 = vector.broadcast %485 : vector<16x1xf32> to vector<16x32xf32>
    %487 = arith.mulf %477, %486 : vector<16x32xf32>
    %488 = vector.broadcast %470 : vector<1x32xf32> to vector<16x32xf32>
    %489 = arith.mulf %487, %488 : vector<16x32xf32>
    %490 = vector.broadcast %471 : vector<1x32xf32> to vector<16x32xf32>
    %491 = arith.addf %489, %490 : vector<16x32xf32>
    %c0_183 = arith.constant 0 : index
    %c0_184 = arith.constant 0 : index
    %492 = vector.load %arg26[%c0_183, %c0_184] : memref<32x32xf32, #tpu.memory_space<vmem>>, vector<32x32xf32>
    %c0_185 = arith.constant 0 : index
    %c0_186 = arith.constant 0 : index
    %493 = vector.load %arg27[%c0_185, %c0_186] : memref<1x32xf32, #tpu.memory_space<vmem>>, vector<1x32xf32>
    %cst_187 = arith.constant dense<0.000000e+00> : vector<16x32xf32>
    %494 = tpu.matmul %491, %492, %cst_187 {dimension_numbers = #tpu.dot_dimension_numbers<[1], [0], [0], [1], [0, 0, 1, 1], [], []>} : vector<16x32xf32>, vector<32x32xf32>, vector<16x32xf32> -> vector<16x32xf32>
    %495 = vector.broadcast %493 : vector<1x32xf32> to vector<16x32xf32>
    %496 = arith.addf %494, %495 : vector<16x32xf32>
    %497 = math.tanh %496 : vector<16x32xf32>
    %c0_188 = arith.constant 0 : index
    %c0_189 = arith.constant 0 : index
    %498 = vector.load %arg28[%c0_188, %c0_189] : memref<32x16xf32, #tpu.memory_space<vmem>>, vector<32x16xf32>
    %c0_190 = arith.constant 0 : index
    %c0_191 = arith.constant 0 : index
    %499 = vector.load %arg29[%c0_190, %c0_191] : memref<1x16xf32, #tpu.memory_space<vmem>>, vector<1x16xf32>
    %cst_192 = arith.constant dense<0.000000e+00> : vector<16x16xf32>
    %500 = tpu.matmul %497, %498, %cst_192 {dimension_numbers = #tpu.dot_dimension_numbers<[1], [0], [0], [1], [0, 0, 1, 1], [], []>} : vector<16x32xf32>, vector<32x16xf32>, vector<16x16xf32> -> vector<16x16xf32>
    %501 = vector.broadcast %499 : vector<1x16xf32> to vector<16x16xf32>
    %502 = arith.addf %500, %501 : vector<16x16xf32>
    %c0_193 = arith.constant 0 : index
    %c0_194 = arith.constant 0 : index
    %503 = vector.load %arg30[%c0_193, %c0_194] : memref<16x16xf32, #tpu.memory_space<vmem>>, vector<16x16xf32>
    tpu.vector_store %arg30[%c0_193, %c0_194], %502 {strides = array<i32>} : memref<16x16xf32, #tpu.memory_space<vmem>>, vector<16x16xf32>,
    return
  }
}

</mosaic_0001>

<bundles_post_ra>
// kernel: transformer_net_forward.1
= control target key start
LH: loop header
LB: loop body
LE: loop exit
PB: predicated region body
PF: predicated region fallthrough
CT: control target
= control target key end

     0   :  { %s5372_s6 = smov 1   ;;  %s5373_s10 = smov 2   ;;  %s6137_s0 = inlined_call_operand.smem [shape: u32[31], index: -1, kind: input, shape index: {}] }
   0x1   :  { %s5429_s5 = sld [smem:[%s6137_s0]]   ;;  %s5374_s14 = smov 3  }
   0x2   :  { %s5434_s9 = sld [smem:[%s6137_s0 + %s5372_s6]]   ;;  %s5375_s18 = smov 4  }
   0x3   :  { %s5439_s13 = sld [smem:[%s6137_s0 + %s5373_s10]]   ;;  %s5376_s22 = smov 5  }
   0x4   :  { %s5444_s17 = sld [smem:[%s6137_s0 + %s5374_s14]]   ;;  %s5377_s26 = smov 6  }
   0x5   :  { %s5449_s21 = sld [smem:[%s6137_s0 + %s5375_s18]]   ;;  %s5378_s30 = smov 7  }
   0x6   :  { %s5454_s25 = sld [smem:[%s6137_s0 + %s5376_s22]]   ;;  %s5379_s4 = smov 8  }
   0x7   :  { %s5459_s29 = sld [smem:[%s6137_s0 + %s5377_s26]]   ;;  %s5380_s10 = smov 9  }
   0x8   :  { %s5464_s3 = sld [smem:[%s6137_s0 + %s5378_s30]]   ;;  %s5381_s15 = smov 10  }
   0x9   :  { %s5469_s8 = sld [smem:[%s6137_s0 + %s5379_s4]]   ;;  %s5382_s20 = smov 11  }
   0xa   :  { %s5474_s14 = sld [smem:[%s6137_s0 + %s5380_s10]]   ;;  %s5383_s26 = smov 12  }
   0xb   :  { %s5479_s19 = sld [smem:[%s6137_s0 + %s5381_s15]]   ;;  %s5384_s1 = smov 13  }
   0xc   :  { %s5484_s24 = sld [smem:[%s6137_s0 + %s5382_s20]]   ;;  %s5385_s7 = smov 14  }
   0xd   :  { %s5489_s30 = sld [smem:[%s6137_s0 + %s5383_s26]]   ;;  %s5386_s15 = smov 15  }
   0xe   :  { %s5494_s6 = sld [smem:[%s6137_s0 + %s5384_s1]]   ;;  %s5387_s22 = smov 16  }
   0xf   :  { %s5499_s12 = sld [smem:[%s6137_s0 + %s5385_s7]]   ;;  %s5388_s28 = smov 17  }
  0x10   :  { %s5504_s20 = sld [smem:[%s6137_s0 + %s5386_s15]]   ;;  %s5389_s7 = smov 18  }
  0x11   :  { %s5509_s27 = sld [smem:[%s6137_s0 + %s5387_s22]]   ;;  %s5390_s15 = smov 19  }
  0x12   :  { %s5514_s4 = sld [smem:[%s6137_s0 + %s5388_s28]]   ;;  %s5391_s22 = smov 20  }
  0x13   :  { %s5392_s28 = smov 21  }
  0x14   :  { %6142 = sst [smem:[#allocation5_spill]] %s5494_s6 }
  0x15   :  { %s5519_s6 = sld [smem:[%s6137_s0 + %s5389_s7]]   ;;  %s5393_s7 = smov 22  }
  0x16   :  { %6143 = sst [smem:[#allocation6_spill]] %s5504_s20 }
  0x17   :  { %6144 = sst [smem:[#allocation7_spill]] %s5509_s27 }
  0x18   :  { %6145 = sst [smem:[#allocation8_spill]] %s5514_s4 }
  0x19   :  { %s5524_s20 = sld [smem:[%s6137_s0 + %s5390_s15]]   ;;  %s5394_s15 = smov 23  }
  0x1a   :  { %s5529_s27 = sld [smem:[%s6137_s0 + %s5391_s22]]   ;;  %s5395_s22 = smov 24  }
  0x1b   :  { %6146 = sst [smem:[#allocation9_spill]] %s5519_s6 }
  0x1c   :  { %s5534_s4 = sld [smem:[%s6137_s0 + %s5392_s28]]   ;;  %s5396_s28 = smov 25  }
  0x1d   :  { %s5539_s6 = sld [smem:[%s6137_s0 + %s5393_s7]]   ;;  %s5397_s7 = smov 26  }
  0x1f   :  { %6147 = sst [smem:[#allocation10_spill]] %s5524_s20 }
  0x20   :  { %6148 = sst [smem:[#allocation11_spill]] %s5529_s27 }
  0x21   :  { %s5544_s20 = sld [smem:[%s6137_s0 + %s5394_s15]]   ;;  %s5398_s15 = smov 27  }
  0x22   :  { %6149 = sst [smem:[#allocation12_spill]] %s5534_s4 }
  0x23   :  { %6150 = sst [smem:[#allocation13_spill]] %s5539_s6 }
  0x24   :  { %s5549_s27 = sld [smem:[%s6137_s0 + %s5395_s22]]   ;;  %s5399_s22 = smov 28  }
  0x25   :  { %s5554_s4 = sld [smem:[%s6137_s0 + %s5396_s28]]   ;;  %s5400_s28 = smov 29  }
  0x26   :  { %s5559_s6 = sld [smem:[%s6137_s0 + %s5397_s7]]   ;;  %s5401_s7 = smov 30  }
  0x27   :  { %6151 = sst [smem:[#allocation14_spill]] %s5544_s20 }
  0x28   :  { %s5564_s20 = sld [smem:[%s6137_s0 + %s5398_s15]]  }
  0x2a   :  { %6152 = sst [smem:[#allocation15_spill]] %s5549_s27 }
  0x2b   :  { %6153 = sst [smem:[#allocation16_spill]] %s5554_s4 }
  0x2c   :  { %6154 = sst [smem:[#allocation17_spill]] %s5559_s6 }
  0x2d   :  { %s5569_s27 = sld [smem:[%s6137_s0 + %s5399_s22]]  }
  0x2e   :  { %s5574_s4 = sld [smem:[%s6137_s0 + %s5400_s28]]  }
  0x2f   :  { %s5579_s6 = sld [smem:[%s6137_s0 + %s5401_s7]]  }
  0x30   :  { %v128_v0 = vld [vmem:[%s5444_s17] sm:$0xff]  ;;  %v129_v1 = vld [vmem:[%s5444_s17 + $0x8] sm:$0xff]  ;;  %v5402_v2 = vmov 0.0|0.0   ;;  %vm5403_vm0 = vmmov 0   ;;  %v5404_v4 = vmov 0.0  }
  0x31   :  { %5066 = vmatprep.subr.bf16.mxu0 %v5402_v2  ;;  %v5067_v3 = vpack.c.bf16 %v129_v1, %v128_v0  ;;  %4735 = vmatprep.mubr.msk.f32.mxu0 %vm5403_vm0, %v5404_v4 }
  0x32   :  { %66 = vsyncpa [#allocation3], 0  ;;  %5069 = vmatprep.subr.bf16.mxu1 %v5402_v2  ;;  %4754 = vmatprep.mubr.msk.f32.mxu1 %vm5403_vm0, %v5404_v4  ;;  %v127_v5 = vld [vmem:[%s5434_s9] sm:$0x3]  ;;  %vm137_vm1 = vcmask 130048   ;;  %v310_v7 = vld [vmem:[%s5464_s3 + $0x8] sm:$0xff] }
  0x33   :  { %5068 = vmatpush3.bf16.msra.mxu0 %v5067_v3  ;;  %v309_v6 = vld [vmem:[%s5464_s3] sm:$0xff]  ;;  %v308_v10 = vld [vmem:[%s5429_s5 + $0x8] sm:$0xff]  ;;  %v220_v14 = vld [vmem:[%s5454_s25 + $0x10] sm:$0xff]  ;;  %vm233_vm2 = vcmask 523264   ;;  %vm412_vm3 = vcmask 261120   ;;  %vm496_vm4 = vcmask 15360  }
  0x34   :  { %v5081_v8 = vpack.c.bf16 %v310_v7, %v309_v6  ;;  %v307_v9 = vld [vmem:[%s5429_s5] sm:$0xff]  ;;  %v219_v12 = vld [vmem:[%s5454_s25 + $0x8] sm:$0xff]  ;;  %v221_v15 = vld [vmem:[%s5454_s25 + $0x18] sm:$0xff]  ;;  %vm503_vm5 = vcmask 1041408   ;;  %s6155_s0 = sld [smem:[#allocation5_spill]]  ;;  %s6156_s5 = sld [smem:[#allocation6_spill]] }
  0x35   :  { %v218_v11 = vld [vmem:[%s5454_s25] sm:$0xff]  ;;  %v5073_v16 = vpack.c.bf16 %v221_v15, %v220_v14  ;;  %v223_v18 = vld [vmem:[%s5454_s25 + $0x28] sm:$0xff]  ;;  %v224_v20 = vld [vmem:[%s5454_s25 + $0x30] sm:$0xff]  ;;  %s5405_s9 = smov 88   ;;  %s5407_s17 = smov 120   ;;  %vm749_vm6 = vcmask 64512  }
  0x36   :  { %4736 = vmatmul.mubr.msk.f32.vlgmr.msra.gmra.mrb[0].mxu0 %vm137_vm1, %v127_v5  ;;  %5082 = vmatprep.subr.bf16.mxu0 %v5081_v8  ;;  %v5070_v13 = vpack.c.bf16 %v219_v12, %v218_v11  ;;  %v222_v17 = vld [vmem:[%s5454_s25 + $0x20] sm:$0xff]  ;;  %v225_v21 = vld [vmem:[%s5454_s25 + $0x38] sm:$0xff]  ;;  %v402_v24 = vld [vmem:[%s5474_s14 + $0x8] sm:$0xff]  ;;  %s5409_s25 = smov 80   ;;  %s5411_s3 = smov 72   ;;  %vm1424_vm7 = vcmask 195584  }
  0x37   :  { %5084 = vmatpush3.bf16.msra.mxu0 %v5081_v8  ;;  %4761 = vmatprep.mubr.msk.f32.mxu0 %vm137_vm1, %v307_v9  ;;  %v5076_v19 = vpack.c.bf16 %v223_v18, %v222_v17  ;;  %v5079_v22 = vpack.c.bf16 %v225_v21, %v224_v20  ;;  %v401_v23 = vld [vmem:[%s5474_s14] sm:$0xff]  ;;  %v403_v25 = vld [vmem:[%s5474_s14 + $0x10] sm:$0xff]  ;;  %v404_v27 = vld [vmem:[%s5474_s14 + $0x18] sm:$0xff]  ;;  %s5413_s14 = smov 48   ;;  %s5416_s15 = smov 8  }
  0x38   :  { %5071 = vmatpush3.bf16.msra.mxu1 %v5070_v13  ;;  %v5085_v26 = vpack.c.bf16 %v402_v24, %v401_v23  ;;  %v5089_v28 = vpack.c.bf16 %v404_v27, %v403_v25  ;;  %v4489_v29 = vld [vmem:[%s5449_s21] ss:$0 sm:$0xff]  ;;  %v495_v51 = vld [vmem:[%s5439_s13 + $0x8] sm:$0xff]  ;;  %v643_v12 = vld [vmem:[%s5499_s12 + $0x10] sm:$0xff]  ;;  %s5408_s21 = smov 112   ;;  %s5417_s16 = smov 16  }
  0x39   :  { %5072 = vmatprep.subr.bf16.mxu1 %v5402_v2  ;;  %v4493_v39 = vld [vmem:[%s5469_s8] ss:$0 sm:$0xff]  ;;  %v583_v58 = vld [vmem:[%s5484_s24 + $0x8] sm:$0xff]  ;;  %v644_v14 = vld [vmem:[%s5499_s12 + $0x18] sm:$0xff]  ;;  %s5412_s8 = smov 64   ;;  %s5418_s18 = smov 24  }
  0x3a   :  { %4762 = vmatmul.mubr.msk.f32.vlgmr.msra.gmra.mrb[2].mxu0 %vm137_vm1, %v308_v10  ;;  %5086 = vmatprep.subr.bf16.mxu0 %v5085_v26  ;;  %v494_v46 = vld [vmem:[%s5439_s13] sm:$0xff]  ;;  %v642_v11 = vld [vmem:[%s5499_s12 + $0x8] sm:$0xff]  ;;  %v5097_v15 = vpack.c.bf16 %v644_v14, %v643_v12  ;;  %s5406_s13 = smov 96   ;;  %s6158_s22 = sld [smem:[#allocation8_spill]] }
  0x3b   :  { %5088 = vmatpush3.bf16.msra.mxu0 %v5085_v26  ;;  %v4491_v47 = vld [vmem:[%s5459_s29] ss:$0 sm:$0xff]  ;;  %s5410_s29 = smov 104   ;;  %s6159_s23 = sld [smem:[#allocation11_spill]] }
  0x3c   :  { %5074 = vmatpush3.bf16.msra.mxu1 %v5073_v16  ;;  %5090 = vmatprep.subr.bf16.mxu0 %v5089_v28  ;;  %v4496_v52 = vld [vmem:[%s5479_s19] ss:$0 sm:$0xff]  ;;  %s5414_s19 = smov 40   ;;  %s6160_s26 = sld [smem:[#allocation9_spill]] }
  0x3d   :  { %5075 = vmatprep.subr.bf16.mxu1 %v5402_v2  ;;  %v582_v55 = vld [vmem:[%s5484_s24] sm:$0xff]  ;;  %s5415_s24 = smov 56   ;;  %s6161_s28 = sld [smem:[#allocation10_spill]] }
  0x3e   :  { %v641_v10 = vld [vmem:[%s5499_s12] sm:$0xff]  ;;  %s6162_s1 = sld [smem:[#allocation13_spill]]  ;;  %s6163_s2 = sld [smem:[#allocation12_spill]] }
  0x3f   :  { %5092 = vmatpush3.bf16.msra.mxu0 %v5089_v28  ;;  %v5093_v13 = vpack.c.bf16 %v642_v11, %v641_v10  ;;  %v4502_v23 = vld [vmem:[%s5489_s30] ss:$0 sm:$0xff]  ;;  %s6157_s30 = sld [smem:[#allocation7_spill]]  ;;  %s6164_s7 = sld [smem:[#allocation14_spill]] }
  0x40   :  { %5077 = vmatpush3.bf16.msra.mxu1 %v5076_v19  ;;  %v4503_v25 = vld [vmem:[%s6155_s0] ss:$0 sm:$0xff]  ;;  %s6165_s10 = sld [smem:[#allocation15_spill]]  ;;  %s6166_s11 = sld [smem:[#allocation16_spill]] }
  0x41   :  { %5078 = vmatprep.subr.bf16.mxu1 %v5402_v2 }
  0x44   :  { %5080 = vmatpush3.bf16.msra.mxu1 %v5079_v22 }
  0x45   :  { %5094 = vmatprep.subr.bf16.mxu1 %v5093_v13 }
 0x109   :  { %v207_v30 = vpop.f32.mrb[0].mxu0 }
 0x10a   :  { %v208_v31 = vadd.f32 %v4489_v29, %v207_v30  ;;  %v4737_v32 = vpop.f32.mrb[1].mxu0 }
 0x10b   :  { %v661_v32 = vlaneseq }
 0x10c   :  { %v211_v33 = vsub.f32 0.0, %v208_v31 }
 0x10d   :  { %v4763_v40 = vpop.f32.mrb[2].mxu0 }
 0x10e   :  { %v212_v34 = vmul.f32 1.442695, %v211_v33  ;;  %v396_v41 = vadd.f32 %v4763_v40, %v4493_v39  ;;  %v390_v42 = vpop.f32.mrb[3].mxu0  ;;  %v5642_v33 = vshrl.u32 %v661_v32, 7 }
 0x10f   :  { %v391_v43 = vadd.f32 %v4493_v39, %v390_v42 }
 0x110   :  { %5244 = vpow2.f32 %v212_v34  ;;  %v5645_v34 = vsub.s32 0, %v5642_v33 }
 0x11a   :  { %v5245_v35 = vpop.eup %5244 }
 0x11b   :  { %v214_v36 = vadd.f32 1.0, %v5245_v35  ;;  %v5648_v35 = vld [vmem:[%s6156_s5] sm:$0x3] }
 0x11d   :  { %5246 = vrcp.f32 %v214_v36  ;;  %v664_v36 = vrot.slane %v5648_v35, %v5645_v34 }
 0x11e   :  { %5248 = vtanh.f32 %v396_v41 }
 0x11f   :  { %5250 = vtanh.f32 %v391_v43 }
 0x127   :  { %v5247_v37 = vpop.eup %5246 }
 0x128   :  { %v217_v38 = vmul.f32 %v5247_v37, %v208_v31  ;;  %v5249_v44 = vpop.eup %5248 }
 0x129   :  { %v5251_v45 = vpop.eup %5250 }
 0x12a   :  { %4755 = vmatmul.mubr.msk.f32.vlgmr.msra.gmra.mrb[0].mxu1 %vm233_vm2, %v217_v38  ;;  %4772 = vmatprep.mubr.msk.f32.mxu0 %vm412_vm3, %v5251_v45 }
 0x12b   :  { %4773 = vmatmul.mubr.msk.f32.vlgmr.msra.gmra.mrb[4].mxu0 %vm412_vm3, %v5249_v44  ;;  %5096 = vmatpush3.bf16.msra.mxu1 %v5093_v13 }
 0x12c   :  { %4777 = vmatprep.mubr.msk.f32.mxu0 %vm496_vm4, %v494_v46  ;;  %5098 = vmatprep.subr.bf16.mxu1 %v5097_v15 }
 0x12f   :  { %5100 = vmatpush3.bf16.msra.mxu1 %v5097_v15 }
 0x130   :  { %4801 = vmatprep.subr.mxu1 %v5404_v4 }
 0x1fd   :  { %v303_v48 = vpop.f32.mrb[0].mxu1 }
 0x1fe   :  { %v304_v49 = vadd.f32 %v4491_v47, %v303_v48  ;;  %v4756_v50 = vpop.f32.mrb[1].mxu1 }
 0x200   :  { %4775 = vmatprep.subr.msk.mxu0 %vm503_vm5, %v304_v49 }
 0x201   :  { %4776 = vmatpush3.msk.msra.mxu0 %vm503_vm5, %v304_v49 }
 0x202   :  { %4778 = vmatmul.mubr.msk.f32.vlgmr.msra.gmra.mrb[4].mxu0 %vm496_vm4, %v495_v51  ;;  %4791 = vmatprep.subr.mxu0 %v5404_v4 }
 0x203   :  { %4793 = vmatprep.mubr.msk.f32.mxu0 %vm5403_vm0, %v5404_v4 }
 0x2d5   :  { %v4779_v53 = vpop.f32.mrb[4].mxu0 }
 0x2d6   :  { %v573_v54 = vpop.f32.mrb[5].mxu0  ;;  %v5189_v56 = vadd.f32 %v4779_v53, %v4496_v52 }
 0x2d7   :  { %v5191_v57 = vadd.f32 %v4496_v52, %v573_v54 }
 0x2d8   :  { %v5190_v61 = vadd.f32 %v5189_v56, %v583_v58 }
 0x2d9   :  { %v5192_v59 = vadd.f32 %v5191_v57, %v582_v55 }
 0x2da   :  { %v593_v62 = vsel %vm412_vm3, %v5190_v61, 0.0 }
 0x2db   :  { %v590_v60 = vsel %vm412_vm3, %v5192_v59, 0.0 }
 0x2dc   :  { %591 = vadd.xlane.f32.xlu0 %v590_v60 }
 0x2e0   :  { %594 = vadd.xlane.f32.xlu0 %v593_v62 }
 0x369   :  { %v592_v63 = vpop.xlane.xlu0 %591 }
 0x36a   :  { %v597_v0 = vmul.f32 0.03125, %v592_v63 }
 0x36c   :  { %v599_v1 = vsub.f32 %v5192_v59, %v597_v0 }
 0x36d   :  { %v595_v2 = vpop.xlane.xlu0 %594 }
 0x36e   :  { %v598_v3 = vmul.f32 0.03125, %v595_v2  ;;  %v601_v5 = vmul.f32 %v599_v1, %v599_v1 }
 0x370   :  { %v600_v6 = vsub.f32 %v5190_v61, %v598_v3  ;;  %v603_v7 = vsel %vm412_vm3, %v601_v5, 0.0 }
 0x371   :  { %604 = vadd.xlane.f32.xlu1 %v603_v7 }
 0x372   :  { %v602_v8 = vmul.f32 %v600_v6, %v600_v6 }
 0x374   :  { %v606_v9 = vsel %vm412_vm3, %v602_v8, 0.0 }
 0x375   :  { %607 = vadd.xlane.f32.xlu1 %v606_v9 }
 0x3fe   :  { %v605_v16 = vpop.xlane.xlu1 %604 }
 0x3ff   :  { %v609_v17 = vmul.f32 0.03125, %v605_v16 }
 0x401   :  { %v611_v18 = vadd.f32 1e-12, %v609_v17 }
 0x402   :  { %v608_v19 = vpop.xlane.xlu1 %607 }
 0x403   :  { %5252 = vrsqrt.f32 %v611_v18  ;;  %v610_v20 = vmul.f32 0.03125, %v608_v19 }
 0x405   :  { %v612_v21 = vadd.f32 1e-12, %v610_v20 }
 0x407   :  { %5254 = vrsqrt.f32 %v612_v21 }
 0x40d   :  { %v5253_v22 = vpop.eup %5252 }
 0x40e   :  { %v615_v24 = vmul.f32 %v5253_v22, %v599_v1 }
 0x410   :  { %v623_v26 = vmul.f32 %v4502_v23, %v615_v24 }
 0x411   :  { %v5255_v27 = vpop.eup %5254 }
 0x412   :  { %v616_v28 = vmul.f32 %v5255_v27, %v600_v6  ;;  %v5632_v29 = vadd.f32 %v4503_v25, %v623_v26 }
 0x414   :  { %v624_v30 = vmul.f32 %v4502_v23, %v616_v28  ;;  %4788 = vmatprep.mubr.msk.f32.mxu1 %vm412_vm3, %v5632_v29 }
 0x416   :  { %v5636_v31 = vadd.f32 %v4503_v25, %v624_v30 }
 0x418   :  { %4789 = vmatmul.mubr.msk.f32.vlgmr.msra.gmra.mrb[2].mxu1 %vm412_vm3, %v5636_v31 }
 0x419   :  { %4803 = vmatprep.mubr.msk.f32.mxu1 %vm5403_vm0, %v5404_v4 }
 0x4eb   :  { %v4790_v37 = vpop.f32.mrb[2].mxu1 }
 0x4ec   :  { %v737_v38 = vpop.f32.mrb[3].mxu1  ;;  %v5666_v40 = vadd.f32 %v4790_v37, %v664_v36 }
 0x4ed   :  { %v5652_v39 = vadd.f32 %v737_v38, %v664_v36 }
 0x4ef   :  { %914 = vrot.lane.b32.xlu1 %v5652_v39, %s5405_s9  ;;  %747 = vrot.lane.b32.xlu0 %v5652_v39, %s5406_s13 }
 0x4f3   :  { %912 = vrot.lane.b32.xlu1 %v5652_v39, %s5407_s17  ;;  %1078 = vrot.lane.b32.xlu0 %v5652_v39, %s5408_s21 }
 0x4f7   :  { %1080 = vrot.lane.b32.xlu1 %v5652_v39, %s5409_s25  ;;  %1244 = vrot.lane.b32.xlu0 %v5652_v39, %s5410_s29 }
 0x4fb   :  { %1246 = vrot.lane.b32.xlu1 %v5652_v39, %s5411_s3  ;;  %1593 = vrot.lane.b32.xlu0 %v5666_v40, %s5405_s9 }
 0x4ff   :  { %1427 = vrot.lane.b32.xlu1 %v5666_v40, %s5406_s13  ;;  %1759 = vrot.lane.b32.xlu0 %v5666_v40, %s5409_s25 }
 0x503   :  { %1591 = vrot.lane.b32.xlu1 %v5666_v40, %s5407_s17  ;;  %1925 = vrot.lane.b32.xlu0 %v5666_v40, %s5411_s3 }
 0x507   :  { %1757 = vrot.lane.b32.xlu1 %v5666_v40, %s5408_s21 }
 0x50b   :  { %1923 = vrot.lane.b32.xlu1 %v5666_v40, %s5410_s29 }
 0x561   :  { %v915_v41 = vpop.permute.xlu1 %914  ;;  %v748_v42 = vpop.permute.xlu0 %747 }
 0x562   :  { %4792 = vmatpush3.xpose.msk.msra.mxu0 %vm749_vm6, %v748_v42  ;;  %4802 = vmatpush3.xpose.msk.msra.mxu1 %vm749_vm6, %v915_v41 }
 0x563   :  { %4811 = vmatprep.subr.mxu1 %v5404_v4  ;;  %4796 = vmatprep.subr.mxu0 %v5404_v4 }
 0x565   :  { %v913_v43 = vpop.permute.xlu1 %912  ;;  %4794 = vmatmul.mubr.msk.f32.vlgmr.msra.gmra.mrb[6].mxu0 %vm749_vm6, %v5652_v39  ;;  %v1079_v44 = vpop.permute.xlu0 %1078 }
 0x566   :  { %4804 = vmatmul.mubr.msk.f32.vlgmr.msra.gmra.mrb[4].mxu1 %vm749_vm6, %v913_v43  ;;  %4798 = vmatprep.mubr.msk.f32.mxu0 %vm5403_vm0, %v5404_v4 }
 0x567   :  { %4813 = vmatprep.mubr.msk.f32.mxu1 %vm5403_vm0, %v5404_v4 }
 0x569   :  { %v1081_v45 = vpop.permute.xlu1 %1080  ;;  %v1245_v46 = vpop.permute.xlu0 %1244 }
 0x56a   :  { %4812 = vmatpush3.xpose.msk.msra.mxu1 %vm749_vm6, %v1081_v45 }
 0x56b   :  { %4821 = vmatprep.subr.mxu1 %v5404_v4 }
 0x56d   :  { %v1247_v47 = vpop.permute.xlu1 %1246  ;;  %4814 = vmatmul.mubr.msk.f32.vlgmr.msra.gmra.mrb[6].mxu1 %vm749_vm6, %v1079_v44  ;;  %v1594_v48 = vpop.permute.xlu0 %1593 }
 0x56e   :  { %4822 = vmatpush3.xpose.msk.msra.mxu1 %vm749_vm6, %v1247_v47  ;;  %4823 = vmatprep.mubr.msk.f32.mxu1 %vm5403_vm0, %v5404_v4 }
 0x56f   :  { %4831 = vmatprep.subr.mxu1 %v5404_v4 }
 0x571   :  { %v1428_v49 = vpop.permute.xlu1 %1427  ;;  %4824 = vmatmul.mubr.msk.f32.vlgmr.msra.gmra.mrb[8].mxu1 %vm749_vm6, %v1245_v46  ;;  %v1760_v51 = vpop.permute.xlu0 %1759 }
 0x572   :  { %4832 = vmatpush3.xpose.msk.msra.mxu1 %vm749_vm6, %v1428_v49  ;;  %4833 = vmatprep.mubr.msk.f32.mxu1 %vm5403_vm0, %v5404_v4 }
 0x573   :  { %4841 = vmatprep.subr.mxu1 %v5404_v4 }
 0x575   :  { %v1592_v50 = vpop.permute.xlu1 %1591  ;;  %4834 = vmatmul.mubr.msk.f32.vlgmr.msra.gmra.mrb[10].mxu1 %vm749_vm6, %v5666_v40  ;;  %v1926_v53 = vpop.permute.xlu0 %1925 }
 0x576   :  { %4842 = vmatpush3.xpose.msk.msra.mxu1 %vm749_vm6, %v1594_v48  ;;  %4843 = vmatprep.mubr.msk.f32.mxu1 %vm5403_vm0, %v5404_v4 }
 0x577   :  { %4851 = vmatprep.subr.mxu1 %v5404_v4 }
 0x579   :  { %4844 = vmatmul.mubr.msk.f32.vlgmr.msra.gmra.mrb[12].mxu1 %vm749_vm6, %v1592_v50  ;;  %v1758_v52 = vpop.permute.xlu1 %1757 }
 0x57a   :  { %4852 = vmatpush3.xpose.msk.msra.mxu1 %vm749_vm6, %v1760_v51  ;;  %4853 = vmatprep.mubr.msk.f32.mxu1 %vm5403_vm0, %v5404_v4 }
 0x57b   :  { %4861 = vmatprep.subr.mxu1 %v5404_v4 }
 0x57d   :  { %4854 = vmatmul.mubr.msk.f32.vlgmr.msra.gmra.mrb[14].mxu1 %vm749_vm6, %v1758_v52  ;;  %v1924_v54 = vpop.permute.xlu1 %1923 }
 0x57e   :  { %4862 = vmatpush3.xpose.msk.msra.mxu1 %vm749_vm6, %v1926_v53  ;;  %4863 = vmatprep.mubr.msk.f32.mxu1 %vm5403_vm0, %v5404_v4 }
 0x581   :  { %4864 = vmatmul.mubr.msk.f32.vlgmr.msra.gmra.mrb[16].mxu1 %vm749_vm6, %v1924_v54 }
 0x638   :  { %v820_v55 = vpop.f32.mrb[6].mxu0 }
 0x639   :  { %v824_v56 = vmul.f32 0.35355338, %v820_v55  ;;  %v4795_v57 = vpop.f32.mrb[7].mxu0  ;;  %v986_v58 = vpop.f32.mrb[4].mxu1 }
 0x63a   :  { %v990_v59 = vmul.f32 0.35355338, %v986_v58  ;;  %v4805_v60 = vpop.f32.mrb[5].mxu1 }
 0x63b   :  { %v825_v61 = vsel %vm749_vm6, %v824_v56, -inf }
 0x63c   :  { %826 = vmax.xlane.f32.xlu0 %v825_v61  ;;  %v991_v62 = vsel %vm749_vm6, %v990_v59, -inf }
 0x63d   :  { %992 = vmax.xlane.f32.xlu1 %v991_v62 }
 0x640   :  { %v1152_v63 = vpop.f32.mrb[6].mxu1 }
 0x641   :  { %v5725_v0 = vmul.f32 0.35355338, %v1152_v63  ;;  %v4815_v1 = vpop.f32.mrb[7].mxu1 }
 0x643   :  { %v1157_v2 = vsel %vm749_vm6, %v5725_v0, -inf }
 0x644   :  { %1158 = vmax.xlane.f32.xlu0 %v1157_v2  ;;  %v1318_v3 = vpop.f32.mrb[8].mxu1 }
 0x645   :  { %v1322_v5 = vmul.f32 0.35355338, %v1318_v3  ;;  %v4825_v6 = vpop.f32.mrb[9].mxu1 }
 0x647   :  { %v1323_v7 = vsel %vm749_vm6, %v1322_v5, -inf }
 0x648   :  { %1324 = vmax.xlane.f32.xlu0 %v1323_v7  ;;  %v1499_v8 = vpop.f32.mrb[10].mxu1 }
 0x649   :  { %v1503_v9 = vmul.f32 0.35355338, %v1499_v8  ;;  %v4835_v10 = vpop.f32.mrb[11].mxu1 }
 0x64b   :  { %v1504_v11 = vsel %vm749_vm6, %v1503_v9, -inf }
 0x64c   :  { %1505 = vmax.xlane.f32.xlu0 %v1504_v11  ;;  %v1665_v12 = vpop.f32.mrb[12].mxu1 }
 0x64d   :  { %v1669_v13 = vmul.f32 0.35355338, %v1665_v12  ;;  %v4845_v14 = vpop.f32.mrb[13].mxu1 }
 0x64f   :  { %v1670_v15 = vsel %vm749_vm6, %v1669_v13, -inf }
 0x650   :  { %1671 = vmax.xlane.f32.xlu1 %v1670_v15  ;;  %v1831_v16 = vpop.f32.mrb[14].mxu1 }
 0x651   :  { %v1835_v17 = vmul.f32 0.35355338, %v1831_v16  ;;  %v4855_v18 = vpop.f32.mrb[15].mxu1 }
 0x653   :  { %v1836_v19 = vsel %vm749_vm6, %v1835_v17, -inf }
 0x654   :  { %1837 = vmax.xlane.f32.xlu0 %v1836_v19  ;;  %v1997_v20 = vpop.f32.mrb[16].mxu1 }
 0x655   :  { %v4865_v21 = vpop.f32.mrb[17].mxu1  ;;  %v2001_v22 = vmul.f32 0.35355338, %v1997_v20 }
 0x657   :  { %v2002_v23 = vsel %vm749_vm6, %v2001_v22, -inf }
 0x661   :  { %836 = vrot.lane.b32.xlu1 %v5652_v39, %s5412_s8 }
 0x685   :  { %2003 = vmax.xlane.f32.xlu1 %v2002_v23 }
 0x696   :  { %1168 = vrot.lane.b32.xlu1 %v5652_v39, %s5413_s14 }
 0x69a   :  { %1334 = vrot.lane.b32.xlu1 %v5652_v39, %s5414_s19 }
 0x69e   :  { %1515 = vrot.lane.b32.xlu1 %v5666_v40, %s5412_s8 }
 0x6c9   :  { %v827_v24 = vpop.xlane.xlu0 %826 }
 0x6ca   :  { %v828_v25 = vsub.f32 %v824_v56, %v827_v24  ;;  %v993_v26 = vpop.xlane.xlu1 %992 }
 0x6cb   :  { %v994_v27 = vsub.f32 %v990_v59, %v993_v26 }
 0x6cc   :  { %v829_v28 = vmul.f32 1.442695, %v828_v25 }
 0x6cd   :  { %v995_v30 = vmul.f32 1.442695, %v994_v27 }
 0x6ce   :  { %5256 = vpow2.f32 %v829_v28 }
 0x6cf   :  { %5258 = vpow2.f32 %v995_v30 }
 0x6d1   :  { %v1159_v32 = vpop.xlane.xlu0 %1158 }
 0x6d2   :  { %v1160_v49 = vsub.f32 %v5725_v0, %v1159_v32 }
 0x6d4   :  { %v1161_v51 = vmul.f32 1.442695, %v1160_v49  ;;  %v645_v49 = vld [vmem:[%s6157_s30] sm:$0xff] }
 0x6d5   :  { %v1325_v36 = vpop.xlane.xlu0 %1324 }
 0x6d6   :  { %v1326_v37 = vsub.f32 %v1322_v5, %v1325_v36 }
 0x6d8   :  { %v5257_v38 = vpop.eup %5256  ;;  %v1327_v41 = vmul.f32 1.442695, %v1326_v37 }
 0x6d9   :  { %v5742_v42 = vpop.eup %5258  ;;  %v831_v43 = vsel %vm749_vm6, %v5257_v38, 0.0  ;;  %v1506_v50 = vpop.xlane.xlu0 %1505 }
 0x6da   :  { %5260 = vpow2.f32 %v1327_v41  ;;  %832 = vadd.xlane.f32.xlu0 %v831_v43  ;;  %v997_v44 = vsel %vm749_vm6, %v5742_v42, 0.0  ;;  %v1507_v52 = vsub.f32 %v1503_v9, %v1506_v50  ;;  %v646_v50 = vld [vmem:[%s6157_s30 + $0x8] sm:$0xff] }
 0x6db   :  { %998 = vadd.xlane.f32.xlu1 %v997_v44  ;;  %5262 = vpow2.f32 %v1161_v51 }
 0x6dc   :  { %v1508_v54 = vmul.f32 1.442695, %v1507_v52  ;;  %v5101_v52 = vpack.c.bf16 %v646_v50, %v645_v49 }
 0x6dd   :  { %v1672_v45 = vpop.xlane.xlu1 %1671 }
 0x6de   :  { %5264 = vpow2.f32 %v1508_v54  ;;  %v1673_v56 = vsub.f32 %v1669_v13, %v1672_v45  ;;  %5102 = vmatprep.subr.bf16.mxu1 %v5101_v52  ;;  %v647_v54 = vld [vmem:[%s6157_s30 + $0x10] sm:$0xff] }
 0x6df   :  { %5104 = vmatpush3.bf16.msra.mxu1 %v5101_v52  ;;  %v5841_v52 = vld [vmem:[%s6161_s28] sm:$0x3] }
 0x6e0   :  { %v1674_v58 = vmul.f32 1.442695, %v1673_v56 }
 0x6e1   :  { %v837_v46 = vpop.permute.xlu1 %836  ;;  %v1838_v53 = vpop.xlane.xlu0 %1837 }
 0x6e2   :  { %4797 = vmatpush3.msra.mxu0 %v837_v46  ;;  %v1839_v55 = vsub.f32 %v1835_v17, %v1838_v53 }
 0x6e3   :  { %4806 = vmatprep.subr.mxu0 %v5404_v4 }
 0x6e4   :  { %v5748_v47 = vpop.eup %5260  ;;  %v1840_v57 = vmul.f32 1.442695, %v1839_v55  ;;  %v648_v55 = vld [vmem:[%s6157_s30 + $0x18] sm:$0xff] }
 0x6e5   :  { %v1329_v48 = vsel %vm749_vm6, %v5748_v47, 0.0  ;;  %v5263_v59 = vpop.eup %5262 }
 0x6e6   :  { %1330 = vadd.xlane.f32.xlu1 %v1329_v48  ;;  %5266 = vpow2.f32 %v1840_v57  ;;  %v5105_v57 = vpack.c.bf16 %v648_v55, %v647_v54 }
 0x6e7   :  { %5268 = vpow2.f32 %v1674_v58 }
 0x6e8   :  { %v5265_v60 = vpop.eup %5264  ;;  %5106 = vmatprep.subr.bf16.mxu1 %v5105_v57 }
 0x6e9   :  { %v1510_v62 = vsel %vm749_vm6, %v5265_v60, 0.0  ;;  %5108 = vmatpush3.bf16.msra.mxu1 %v5105_v57 }
 0x6f0   :  { %1002 = vrot.lane.b32.xlu0 %v5652_v39, %s5415_s24  ;;  %v1163_v39 = vsel %vm749_vm6, %v5263_v59, 0.0  ;;  %v5759_v63 = vpop.eup %5266 }
 0x6f1   :  { %v1842_v2 = vsel %vm749_vm6, %v5759_v63, 0.0  ;;  %v5269_v3 = vpop.eup %5268 }
 0x6f2   :  { %v1676_v5 = vsel %vm749_vm6, %v5269_v3, 0.0 }
 0x6f7   :  { %1681 = vrot.lane.b32.xlu1 %v5666_v40, %s5415_s24 }
 0x70f   :  { %1164 = vadd.xlane.f32.xlu0 %v1163_v39 }
 0x712   :  { %v2004_v61 = vpop.xlane.xlu1 %2003 }
 0x713   :  { %v2005_v0 = vsub.f32 %v2001_v22, %v2004_v61  ;;  %1511 = vadd.xlane.f32.xlu0 %v1510_v62 }
 0x715   :  { %v2006_v1 = vmul.f32 1.442695, %v2005_v0 }
 0x716   :  { %v1169_v8 = vpop.permute.xlu1 %1168 }
 0x717   :  { %5270 = vpow2.f32 %v2006_v1  ;;  %1843 = vadd.xlane.f32.xlu0 %v1842_v2 }
 0x71a   :  { %v1335_v9 = vpop.permute.xlu1 %1334 }
 0x71b   :  { %1677 = vadd.xlane.f32.xlu1 %v1676_v5 }
 0x71e   :  { %v1516_v10 = vpop.permute.xlu1 %1515 }
 0x721   :  { %v5764_v6 = vpop.eup %5270 }
 0x722   :  { %v2008_v7 = vsel %vm749_vm6, %v5764_v6, 0.0 }
 0x723   :  { %2009 = vadd.xlane.f32.xlu0 %v2008_v7 }
 0x72c   :  { %2013 = vrot.lane.b32.xlu1 %v5666_v40, %s5414_s19 }
 0x739   :  { %1847 = vrot.lane.b32.xlu0 %v5666_v40, %s5413_s14 }
 0x767   :  { %v833_v11 = vpop.xlane.xlu0 %832 }
 0x768   :  { %5272 = vrcp.f32 %v833_v11  ;;  %v999_v12 = vpop.xlane.xlu1 %998 }
 0x769   :  { %5274 = vrcp.f32 %v999_v12 }
 0x76b   :  { %v1003_v16 = vpop.permute.xlu0 %1002 }
 0x772   :  { %v5273_v13 = vpop.eup %5272 }
 0x773   :  { %v835_v14 = vmul.f32 %v5273_v13, %v5257_v38  ;;  %v5275_v15 = vpop.eup %5274  ;;  %v1331_v40 = vpop.xlane.xlu1 %1330 }
 0x774   :  { %v1001_v17 = vmul.f32 %v5275_v15, %v5742_v42  ;;  %v5823_v15 = vld [vmem:[%s6158_s22] sm:$0x3] }
 0x775   :  { %4799 = vmatmul.mubr.msk.f32.vlgmr.msra.gmra.mrb[8].mxu0 %vm749_vm6, %v835_v14 }
 0x776   :  { %4807 = vmatpush3.msra.mxu0 %v1003_v16  ;;  %4808 = vmatprep.mubr.msk.f32.mxu0 %vm5403_vm0, %v5404_v4  ;;  %v2107_v16 = vrot.slane %v5823_v15, %v5645_v34 }
 0x777   :  { %4816 = vmatprep.subr.mxu0 %v5404_v4  ;;  %v1682_v20 = vpop.permute.xlu1 %1681 }
 0x779   :  { %4809 = vmatmul.mubr.msk.f32.vlgmr.msra.gmra.mrb[10].mxu0 %vm749_vm6, %v1001_v17 }
 0x77a   :  { %4817 = vmatpush3.msra.mxu0 %v1169_v8  ;;  %4818 = vmatprep.mubr.msk.f32.mxu0 %vm5403_vm0, %v5404_v4 }
 0x77b   :  { %4826 = vmatprep.subr.mxu0 %v5404_v4 }
 0x79c   :  { %v1165_v18 = vpop.xlane.xlu0 %1164 }
 0x79d   :  { %5276 = vrcp.f32 %v1165_v18 }
 0x79e   :  { %5278 = vrcp.f32 %v1331_v40 }
 0x7a0   :  { %v1512_v19 = vpop.xlane.xlu0 %1511 }
 0x7a1   :  { %5280 = vrcp.f32 %v1512_v19 }
 0x7a4   :  { %v1844_v23 = vpop.xlane.xlu0 %1843 }
 0x7a7   :  { %v5277_v21 = vpop.eup %5276 }
 0x7a8   :  { %v1167_v22 = vmul.f32 %v5277_v21, %v5263_v59  ;;  %v1678_v24 = vpop.xlane.xlu1 %1677  ;;  %v5279_v25 = vpop.eup %5278 }
 0x7a9   :  { %5282 = vrcp.f32 %v1678_v24  ;;  %v1333_v26 = vmul.f32 %v5279_v25, %v5748_v47 }
 0x7aa   :  { %4819 = vmatmul.mubr.msk.f32.vlgmr.msra.gmra.mrb[12].mxu0 %vm749_vm6, %v1167_v22  ;;  %5284 = vrcp.f32 %v1844_v23 }
 0x7ab   :  { %4827 = vmatpush3.msra.mxu0 %v1335_v9  ;;  %4828 = vmatprep.mubr.msk.f32.mxu0 %vm5403_vm0, %v5404_v4  ;;  %v5281_v27 = vpop.eup %5280 }
 0x7ac   :  { %4836 = vmatprep.subr.mxu0 %v5404_v4  ;;  %v1514_v28 = vmul.f32 %v5281_v27, %v5265_v60  ;;  %v2014_v42 = vpop.permute.xlu1 %2013 }
 0x7ae   :  { %4829 = vmatmul.mubr.msk.f32.vlgmr.msra.gmra.mrb[14].mxu0 %vm749_vm6, %v1333_v26 }
 0x7af   :  { %4837 = vmatpush3.msra.mxu0 %v1516_v10  ;;  %4838 = vmatprep.mubr.msk.f32.mxu0 %vm5403_vm0, %v5404_v4 }
 0x7b0   :  { %v2010_v30 = vpop.xlane.xlu0 %2009  ;;  %4846 = vmatprep.subr.mxu0 %v5404_v4 }
 0x7b1   :  { %5286 = vrcp.f32 %v2010_v30 }
 0x7b2   :  { %4839 = vmatmul.mubr.msk.f32.vlgmr.msra.gmra.mrb[16].mxu0 %vm749_vm6, %v1514_v28 }
 0x7b3   :  { %v5283_v32 = vpop.eup %5282  ;;  %4847 = vmatpush3.msra.mxu0 %v1682_v20  ;;  %4848 = vmatprep.mubr.msk.f32.mxu0 %vm5403_vm0, %v5404_v4 }
 0x7b4   :  { %v1680_v36 = vmul.f32 %v5283_v32, %v5269_v3  ;;  %v1848_v37 = vpop.permute.xlu0 %1847  ;;  %4856 = vmatprep.subr.mxu0 %v5404_v4  ;;  %v5285_v38 = vpop.eup %5284 }
 0x7b5   :  { %v1846_v41 = vmul.f32 %v5285_v38, %v5759_v63  ;;  %v650_v38 = vld [vmem:[%s6159_s23 + $0x8] sm:$0xff] }
 0x7b6   :  { %4849 = vmatmul.mubr.msk.f32.vlgmr.msra.gmra.mrb[18].mxu0 %vm749_vm6, %v1680_v36 }
 0x7b7   :  { %4857 = vmatpush3.msra.mxu0 %v1848_v37  ;;  %4858 = vmatprep.mubr.msk.f32.mxu0 %vm5403_vm0, %v5404_v4  ;;  %v649_v37 = vld [vmem:[%s6159_s23] sm:$0xff] }
 0x7b8   :  { %4866 = vmatprep.subr.mxu0 %v5404_v4 }
 0x7ba   :  { %4859 = vmatmul.mubr.msk.f32.vlgmr.msra.gmra.mrb[20].mxu0 %vm749_vm6, %v1846_v41  ;;  %v5109_v41 = vpack.c.bf16 %v650_v38, %v649_v37 }
 0x7bb   :  { %v5287_v43 = vpop.eup %5286  ;;  %4867 = vmatpush3.msra.mxu0 %v2014_v42  ;;  %4868 = vmatprep.mubr.msk.f32.mxu0 %vm5403_vm0, %v5404_v4  ;;  %v651_v42 = vld [vmem:[%s6159_s23 + $0x10] sm:$0xff] }
 0x7bc   :  { %v2012_v44 = vmul.f32 %v5287_v43, %v5764_v6  ;;  %5110 = vmatprep.subr.bf16.mxu0 %v5109_v41  ;;  %v652_v43 = vld [vmem:[%s6159_s23 + $0x18] sm:$0xff] }
 0x7be   :  { %4869 = vmatmul.mubr.msk.f32.vlgmr.msra.gmra.mrb[22].mxu0 %vm749_vm6, %v2012_v44  ;;  %v5113_v44 = vpack.c.bf16 %v652_v43, %v651_v42 }
 0x7bf   :  { %5112 = vmatpush3.bf16.msra.mxu0 %v5109_v41 }
 0x7c0   :  { %5114 = vmatprep.subr.bf16.mxu0 %v5113_v44 }
 0x7c3   :  { %5116 = vmatpush3.bf16.msra.mxu0 %v5113_v44 }
 0x848   :  { %v908_v45 = vpop.f32.mrb[8].mxu0 }
 0x849   :  { %v4800_v46 = vpop.f32.mrb[9].mxu0 }
 0x84c   :  { %v1074_v47 = vpop.f32.mrb[10].mxu0 }
 0x84d   :  { %1411 = vrot.lane.b32.xlu0 %v1074_v47, %s5416_s15  ;;  %v4810_v48 = vpop.f32.mrb[11].mxu0 }
 0x87d   :  { %v1240_v51 = vpop.f32.mrb[12].mxu0 }
 0x87e   :  { %1415 = vrot.lane.b32.xlu1 %v1240_v51, %s5417_s16  ;;  %v4820_v53 = vpop.f32.mrb[13].mxu0  ;;  %v5838_v51 = vld [vmem:[%s6160_s26] sm:$0x3] }
 0x87f   :  { %v2220_v53 = vrot.slane %v5838_v51, %v5645_v34 }
 0x881   :  { %v1406_v56 = vpop.f32.mrb[14].mxu0 }
 0x882   :  { %1419 = vrot.lane.b32.xlu1 %v1406_v56, %s5418_s18  ;;  %v4830_v58 = vpop.f32.mrb[15].mxu0  ;;  %v2226_v56 = vrot.slane %v5841_v52, %v5645_v34 }
 0x885   :  { %v1587_v59 = vpop.f32.mrb[16].mxu0 }
 0x886   :  { %v4840_v39 = vpop.f32.mrb[17].mxu0 }
 0x889   :  { %v1753_v60 = vpop.f32.mrb[18].mxu0 }
 0x88a   :  { %2090 = vrot.lane.b32.xlu0 %v1753_v60, %s5416_s15  ;;  %v4850_v61 = vpop.f32.mrb[19].mxu0 }
 0x88d   :  { %v1919_v62 = vpop.f32.mrb[20].mxu0 }
 0x88e   :  { %2094 = vrot.lane.b32.xlu0 %v1919_v62, %s5417_s16  ;;  %v4860_v63 = vpop.f32.mrb[21].mxu0  ;;  %v653_v62 = vld [vmem:[%s6162_s1] sm:$0xff] }
 0x88f   :  { %v654_v63 = vld [vmem:[%s6162_s1 + $0x8] sm:$0xff] }
 0x891   :  { %v2085_v0 = vpop.f32.mrb[22].mxu0 }
 0x892   :  { %2098 = vrot.lane.b32.xlu1 %v2085_v0, %s5418_s18  ;;  %v4870_v1 = vpop.f32.mrb[23].mxu0  ;;  %v5117_v0 = vpack.c.bf16 %v654_v63, %v653_v62 }
 0x893   :  { %v655_v1 = vld [vmem:[%s6162_s1 + $0x10] sm:$0xff] }
 0x894   :  { %5118 = vmatprep.subr.bf16.mxu1 %v5117_v0 }
 0x8bf   :  { %v1412_v2 = vpop.permute.xlu0 %1411 }
 0x8c0   :  { %v1422_v5 = vsel %vm749_vm6, %v908_v45, %v1412_v2  ;;  %v656_v2 = vld [vmem:[%s6162_s1 + $0x18] sm:$0xff] }
 0x8f0   :  { %v1416_v3 = vpop.permute.xlu1 %1415 }
 0x8f1   :  { %v1423_v6 = vsel %vm137_vm1, %v1422_v5, %v1416_v3  ;;  %v5121_v3 = vpack.c.bf16 %v656_v2, %v655_v1  ;;  %v657_v5 = vld [vmem:[%s6162_s1 + $0x20] sm:$0xff] }
 0x8f2   :  { %v5882_v1 = vld [vmem:[%s6165_s10] sm:$0x3] }
 0x8f3   :  { %v5885_v2 = vld [vmem:[%s6166_s11] sm:$0x3] }
 0x8f4   :  { %v1420_v7 = vpop.permute.xlu1 %1419 }
 0x8f5   :  { %v1425_v8 = vsel %vm1424_vm7, %v1423_v6, %v1420_v7  ;;  %v658_v6 = vld [vmem:[%s6162_s1 + $0x28] sm:$0xff] }
 0x8f6   :  { %4879 = vmatprep.mubr.msk.f32.mxu1 %vm412_vm3, %v1425_v8  ;;  %v5125_v7 = vpack.c.bf16 %v658_v6, %v657_v5  ;;  %v659_v8 = vld [vmem:[%s6162_s1 + $0x30] sm:$0xff] }
 0x8fc   :  { %v2091_v9 = vpop.permute.xlu0 %2090 }
 0x8fd   :  { %v2101_v11 = vsel %vm749_vm6, %v1587_v59, %v2091_v9  ;;  %v660_v9 = vld [vmem:[%s6162_s1 + $0x38] sm:$0xff] }
 0x900   :  { %v2095_v10 = vpop.permute.xlu0 %2094 }
 0x901   :  { %v2102_v12 = vsel %vm137_vm1, %v2101_v11, %v2095_v10  ;;  %v5129_v10 = vpack.c.bf16 %v660_v9, %v659_v8  ;;  %v5859_v11 = vld [vmem:[%s6163_s2] sm:$0x3]  ;;  %v2446_v9 = vrot.slane %v5885_v2, %v5645_v34 }
 0x904   :  { %v2099_v13 = vpop.permute.xlu1 %2098 }
 0x905   :  { %v2103_v14 = vsel %vm1424_vm7, %v2102_v12, %v2099_v13  ;;  %v2232_v12 = vrot.slane %v5859_v11, %v5645_v34 }
 0x906   :  { %4880 = vmatmul.mubr.msk.f32.vlgmr.msra.gmra.mrb[18].mxu1 %vm412_vm3, %v2103_v14 }
 0x907   :  { %5120 = vmatpush3.bf16.msra.mxu1 %v5117_v0 }
 0x908   :  { %5122 = vmatprep.subr.bf16.mxu1 %v5121_v3 }
 0x90b   :  { %5124 = vmatpush3.bf16.msra.mxu1 %v5121_v3  ;;  %v2440_v3 = vrot.slane %v5882_v1, %v5645_v34 }
 0x90c   :  { %5126 = vmatprep.subr.bf16.mxu1 %v5125_v7 }
 0x90f   :  { %5128 = vmatpush3.bf16.msra.mxu1 %v5125_v7 }
 0x910   :  { %5130 = vmatprep.subr.bf16.mxu1 %v5129_v10 }
 0x913   :  { %5132 = vmatpush3.bf16.msra.mxu1 %v5129_v10 }
 0x914   :  { %4933 = vmatprep.subr.mxu1 %v5404_v4 }
 0x9d9   :  { %v4881_v17 = vpop.f32.mrb[18].mxu1 }
 0x9da   :  { %v2186_v40 = vadd.f32 %v4881_v17, %v2107_v16  ;;  %v2180_v18 = vpop.f32.mrb[19].mxu1 }
 0x9db   :  { %v2181_v19 = vadd.f32 %v2180_v18, %v2107_v16 }
 0x9dc   :  { %v2190_v20 = vadd.f32 %v2186_v40, %v5636_v31 }
 0x9dd   :  { %v2189_v21 = vadd.f32 %v2181_v19, %v5632_v29 }
 0x9de   :  { %v2194_v22 = vsel %vm412_vm3, %v2190_v20, 0.0 }
 0x9df   :  { %2195 = vadd.xlane.f32.xlu1 %v2194_v22  ;;  %v2191_v23 = vsel %vm412_vm3, %v2189_v21, 0.0 }
 0x9e0   :  { %2192 = vadd.xlane.f32.xlu0 %v2191_v23 }
 0xa6c   :  { %v2196_v24 = vpop.xlane.xlu1 %2195 }
 0xa6d   :  { %v2198_v25 = vmul.f32 0.03125, %v2196_v24  ;;  %v2193_v26 = vpop.xlane.xlu0 %2192 }
 0xa6e   :  { %v2197_v27 = vmul.f32 0.03125, %v2193_v26 }
 0xa6f   :  { %v2200_v28 = vsub.f32 %v2190_v20, %v2198_v25 }
 0xa70   :  { %v2199_v30 = vsub.f32 %v2189_v21, %v2197_v27  ;;  %v5868_v27 = vld [vmem:[%s6164_s7] sm:$0x3] }
 0xa71   :  { %v2202_v29 = vmul.f32 %v2200_v28, %v2200_v28 }
 0xa72   :  { %v2201_v32 = vmul.f32 %v2199_v30, %v2199_v30 }
 0xa73   :  { %v2206_v36 = vsel %vm412_vm3, %v2202_v29, 0.0 }
 0xa74   :  { %v2203_v31 = vsel %vm412_vm3, %v2201_v32, 0.0 }
 0xa75   :  { %2204 = vadd.xlane.f32.xlu0 %v2203_v31 }
 0xa79   :  { %2207 = vadd.xlane.f32.xlu0 %v2206_v36 }
 0xb02   :  { %v2205_v45 = vpop.xlane.xlu0 %2204 }
 0xb03   :  { %v2209_v46 = vmul.f32 0.03125, %v2205_v45 }
 0xb05   :  { %v2211_v47 = vadd.f32 1e-12, %v2209_v46 }
 0xb06   :  { %v2208_v48 = vpop.xlane.xlu0 %2207 }
 0xb07   :  { %5288 = vrsqrt.f32 %v2211_v47  ;;  %v2210_v49 = vmul.f32 0.03125, %v2208_v48 }
 0xb09   :  { %v2212_v50 = vadd.f32 1e-12, %v2210_v49 }
 0xb0b   :  { %5290 = vrsqrt.f32 %v2212_v50 }
 0xb11   :  { %v5289_v54 = vpop.eup %5288 }
 0xb12   :  { %v2215_v55 = vmul.f32 %v5289_v54, %v2199_v30  ;;  %v2449_v54 = vld [vmem:[%s5499_s12 + $0x20] sm:$0xff] }
 0xb14   :  { %v2221_v57 = vmul.f32 %v2220_v53, %v2215_v55  ;;  %v2450_v55 = vld [vmem:[%s5499_s12 + $0x28] sm:$0xff] }
 0xb15   :  { %v5291_v58 = vpop.eup %5290 }
 0xb16   :  { %v2216_v59 = vmul.f32 %v5291_v58, %v2200_v28  ;;  %v2227_v39 = vadd.f32 %v2226_v56, %v2221_v57  ;;  %v2327_v28 = vrot.slane %v5868_v27, %v5645_v34  ;;  %v2451_v57 = vld [vmem:[%s5499_s12 + $0x30] sm:$0xff]  ;;  %v2452_v58 = vld [vmem:[%s5499_s12 + $0x38] sm:$0xff]  ;;  %s6167_s12 = sld [smem:[#allocation17_spill]] }
 0xb18   :  { %v2222_v60 = vmul.f32 %v2220_v53, %v2216_v59  ;;  %4890 = vmatprep.mubr.msk.f32.mxu0 %vm412_vm3, %v2227_v39  ;;  %v5137_v59 = vpack.c.bf16 %v2452_v58, %v2451_v57 }
 0xb1a   :  { %v2228_v61 = vadd.f32 %v2226_v56, %v2222_v60  ;;  %v5133_v56 = vpack.c.bf16 %v2450_v55, %v2449_v54 }
 0xb1c   :  { %4891 = vmatmul.mubr.msk.f32.vlgmr.msra.gmra.mrb[24].mxu0 %vm412_vm3, %v2228_v61  ;;  %5134 = vmatprep.subr.bf16.mxu0 %v5133_v56 }
 0xb1d   :  { %5136 = vmatpush3.bf16.msra.mxu0 %v5133_v56 }
 0xb1e   :  { %5138 = vmatprep.subr.bf16.mxu0 %v5137_v59 }
 0xb21   :  { %5140 = vmatpush3.bf16.msra.mxu0 %v5137_v59 }
 0xb22   :  { %4923 = vmatprep.subr.mxu0 %v5404_v4 }
 0xbef   :  { %v4892_v13 = vpop.f32.mrb[24].mxu0 }
 0xbf0   :  { %v2311_v14 = vadd.f32 %v4892_v13, %v2232_v12  ;;  %v2305_v16 = vpop.f32.mrb[25].mxu0 }
 0xbf1   :  { %v2306_v17 = vadd.f32 %v2305_v16, %v2232_v12  ;;  %v5902_v16 = vsub.s32 1, %v5642_v33 }
 0xbf2   :  { %v2317_v40 = vmul.f32 0.70710677, %v2311_v14  ;;  %v2315_v24 = vmul.f32 0.5, %v2311_v14 }
 0xbf3   :  { %v2316_v18 = vmul.f32 0.70710677, %v2306_v17  ;;  %v2314_v22 = vmul.f32 0.5, %v2306_v17  ;;  %v2472_v34 = vrot.slane %v5648_v35, %v5902_v16 }
 0xbf4   :  { %5292 = verf.f32 %v2317_v40 }
 0xbf5   :  { %5294 = verf.f32 %v2316_v18 }
 0xbfe   :  { %v5293_v19 = vpop.eup %5292 }
 0xbff   :  { %v5295_v20 = vpop.eup %5294  ;;  %v2321_v21 = vadd.f32 1.0, %v5293_v19 }
 0xc00   :  { %v2320_v23 = vadd.f32 1.0, %v5295_v20 }
 0xc01   :  { %v2323_v26 = vmul.f32 %v2321_v21, %v2315_v24 }
 0xc02   :  { %v2322_v25 = vmul.f32 %v2320_v23, %v2314_v22 }
 0xc04   :  { %4909 = vmatprep.mubr.msk.f32.mxu1 %vm233_vm2, %v2322_v25 }
 0xc05   :  { %4910 = vmatmul.mubr.msk.f32.vlgmr.msra.gmra.mrb[20].mxu1 %vm233_vm2, %v2323_v26 }
 0xc06   :  { %4935 = vmatprep.mubr.msk.f32.mxu1 %vm5403_vm0, %v5404_v4 }
 0xcd8   :  { %v4911_v30 = vpop.f32.mrb[20].mxu1 }
 0xcd9   :  { %v2406_v32 = vadd.f32 %v4911_v30, %v2327_v28  ;;  %v2400_v31 = vpop.f32.mrb[21].mxu1 }
 0xcda   :  { %v2401_v29 = vadd.f32 %v2400_v31, %v2327_v28 }
 0xcdb   :  { %v2410_v36 = vadd.f32 %v2406_v32, %v2228_v61 }
 0xcdc   :  { %v2409_v37 = vadd.f32 %v2401_v29, %v2227_v39 }
 0xcdd   :  { %v2414_v38 = vsel %vm412_vm3, %v2410_v36, 0.0 }
 0xcde   :  { %2415 = vadd.xlane.f32.xlu1 %v2414_v38  ;;  %v2411_v41 = vsel %vm412_vm3, %v2409_v37, 0.0 }
 0xcdf   :  { %2412 = vadd.xlane.f32.xlu0 %v2411_v41 }
 0xd6b   :  { %v2416_v42 = vpop.xlane.xlu1 %2415 }
 0xd6c   :  { %v2418_v43 = vmul.f32 0.03125, %v2416_v42  ;;  %v2413_v44 = vpop.xlane.xlu0 %2412 }
 0xd6d   :  { %v2417_v45 = vmul.f32 0.03125, %v2413_v44 }
 0xd6e   :  { %v2420_v46 = vsub.f32 %v2410_v36, %v2418_v43 }
 0xd6f   :  { %v2419_v47 = vsub.f32 %v2409_v37, %v2417_v45 }
 0xd70   :  { %v2422_v48 = vmul.f32 %v2420_v46, %v2420_v46 }
 0xd71   :  { %v2421_v49 = vmul.f32 %v2419_v47, %v2419_v47 }
 0xd72   :  { %v2426_v50 = vsel %vm412_vm3, %v2422_v48, 0.0 }
 0xd73   :  { %2427 = vadd.xlane.f32.xlu1 %v2426_v50  ;;  %v2423_v53 = vsel %vm412_vm3, %v2421_v49, 0.0 }
 0xd74   :  { %2424 = vadd.xlane.f32.xlu0 %v2423_v53 }
 0xe00   :  { %v2428_v39 = vpop.xlane.xlu1 %2427 }
 0xe01   :  { %v2430_v60 = vmul.f32 0.03125, %v2428_v39  ;;  %v2425_v61 = vpop.xlane.xlu0 %2424 }
 0xe02   :  { %v2429_v62 = vmul.f32 0.03125, %v2425_v61 }
 0xe03   :  { %v2432_v63 = vadd.f32 1e-12, %v2430_v60 }
 0xe04   :  { %v2431_v0 = vadd.f32 1e-12, %v2429_v62 }
 0xe05   :  { %5296 = vrsqrt.f32 %v2432_v63 }
 0xe06   :  { %5298 = vrsqrt.f32 %v2431_v0 }
 0xe0f   :  { %v5297_v5 = vpop.eup %5296 }
 0xe10   :  { %v5299_v6 = vpop.eup %5298  ;;  %v2436_v7 = vmul.f32 %v5297_v5, %v2420_v46 }
 0xe11   :  { %v2435_v8 = vmul.f32 %v5299_v6, %v2419_v47 }
 0xe12   :  { %v2442_v10 = vmul.f32 %v2440_v3, %v2436_v7 }
 0xe13   :  { %v2441_v12 = vmul.f32 %v2440_v3, %v2435_v8 }
 0xe14   :  { %v5893_v14 = vadd.f32 %v2446_v9, %v2442_v10 }
 0xe15   :  { %v5891_v13 = vadd.f32 %v2446_v9, %v2441_v12 }
 0xe17   :  { %4920 = vmatprep.mubr.msk.f32.mxu0 %vm412_vm3, %v5891_v13 }
 0xe18   :  { %4921 = vmatmul.mubr.msk.f32.vlgmr.msra.gmra.mrb[26].mxu0 %vm412_vm3, %v5893_v14 }
 0xe19   :  { %4925 = vmatprep.mubr.msk.f32.mxu0 %vm5403_vm0, %v5404_v4 }
 0xeeb   :  { %v4922_v17 = vpop.f32.mrb[26].mxu0 }
 0xeec   :  { %v2545_v40 = vpop.f32.mrb[27].mxu0  ;;  %v5920_v33 = vadd.f32 %v4922_v17, %v2472_v34 }
 0xeed   :  { %v5906_v18 = vadd.f32 %v2545_v40, %v2472_v34 }
 0xeef   :  { %2721 = vrot.lane.b32.xlu1 %v5906_v18, %s5405_s9  ;;  %2555 = vrot.lane.b32.xlu0 %v5906_v18, %s5406_s13 }
 0xef3   :  { %2719 = vrot.lane.b32.xlu1 %v5906_v18, %s5407_s17  ;;  %2885 = vrot.lane.b32.xlu0 %v5906_v18, %s5408_s21 }
 0xef7   :  { %2887 = vrot.lane.b32.xlu1 %v5906_v18, %s5409_s25  ;;  %3051 = vrot.lane.b32.xlu0 %v5906_v18, %s5410_s29 }
 0xefb   :  { %3053 = vrot.lane.b32.xlu1 %v5906_v18, %s5411_s3  ;;  %3399 = vrot.lane.b32.xlu0 %v5920_v33, %s5405_s9 }
 0xeff   :  { %3233 = vrot.lane.b32.xlu1 %v5920_v33, %s5406_s13  ;;  %3565 = vrot.lane.b32.xlu0 %v5920_v33, %s5409_s25 }
 0xf03   :  { %3397 = vrot.lane.b32.xlu1 %v5920_v33, %s5407_s17  ;;  %3731 = vrot.lane.b32.xlu0 %v5920_v33, %s5411_s3 }
 0xf07   :  { %3563 = vrot.lane.b32.xlu1 %v5920_v33, %s5408_s21 }
 0xf0b   :  { %3729 = vrot.lane.b32.xlu1 %v5920_v33, %s5410_s29 }
 0xf61   :  { %v2722_v35 = vpop.permute.xlu1 %2721  ;;  %v2556_v19 = vpop.permute.xlu0 %2555 }
 0xf62   :  { %4924 = vmatpush3.xpose.msk.msra.mxu0 %vm749_vm6, %v2556_v19  ;;  %4934 = vmatpush3.xpose.msk.msra.mxu1 %vm749_vm6, %v2722_v35 }
 0xf63   :  { %4943 = vmatprep.subr.mxu1 %v5404_v4  ;;  %4928 = vmatprep.subr.mxu0 %v5404_v4 }
 0xf65   :  { %v2720_v20 = vpop.permute.xlu1 %2719  ;;  %4926 = vmatmul.mubr.msk.f32.vlgmr.msra.gmra.mrb[28].mxu0 %vm749_vm6, %v5906_v18  ;;  %v2886_v21 = vpop.permute.xlu0 %2885 }
 0xf66   :  { %4936 = vmatmul.mubr.msk.f32.vlgmr.msra.gmra.mrb[22].mxu1 %vm749_vm6, %v2720_v20  ;;  %4930 = vmatprep.mubr.msk.f32.mxu0 %vm5403_vm0, %v5404_v4 }
 0xf67   :  { %4945 = vmatprep.mubr.msk.f32.mxu1 %vm5403_vm0, %v5404_v4 }
 0xf69   :  { %v2888_v22 = vpop.permute.xlu1 %2887  ;;  %v3052_v23 = vpop.permute.xlu0 %3051 }
 0xf6a   :  { %4944 = vmatpush3.xpose.msk.msra.mxu1 %vm749_vm6, %v2888_v22 }
 0xf6b   :  { %4953 = vmatprep.subr.mxu1 %v5404_v4 }
 0xf6d   :  { %v3054_v24 = vpop.permute.xlu1 %3053  ;;  %4946 = vmatmul.mubr.msk.f32.vlgmr.msra.gmra.mrb[24].mxu1 %vm749_vm6, %v2886_v21  ;;  %v3400_v25 = vpop.permute.xlu0 %3399 }
 0xf6e   :  { %4954 = vmatpush3.xpose.msk.msra.mxu1 %vm749_vm6, %v3054_v24  ;;  %4955 = vmatprep.mubr.msk.f32.mxu1 %vm5403_vm0, %v5404_v4 }
 0xf6f   :  { %4963 = vmatprep.subr.mxu1 %v5404_v4 }
 0xf71   :  { %v3234_v26 = vpop.permute.xlu1 %3233  ;;  %4956 = vmatmul.mubr.msk.f32.vlgmr.msra.gmra.mrb[26].mxu1 %vm749_vm6, %v3052_v23  ;;  %v3566_v30 = vpop.permute.xlu0 %3565 }
 0xf72   :  { %4964 = vmatpush3.xpose.msk.msra.mxu1 %vm749_vm6, %v3234_v26  ;;  %4965 = vmatprep.mubr.msk.f32.mxu1 %vm5403_vm0, %v5404_v4 }
 0xf73   :  { %4973 = vmatprep.subr.mxu1 %v5404_v4 }
 0xf75   :  { %v3398_v28 = vpop.permute.xlu1 %3397  ;;  %4966 = vmatmul.mubr.msk.f32.vlgmr.msra.gmra.mrb[28].mxu1 %vm749_vm6, %v5920_v33  ;;  %v3732_v31 = vpop.permute.xlu0 %3731 }
 0xf76   :  { %4974 = vmatpush3.xpose.msk.msra.mxu1 %vm749_vm6, %v3400_v25  ;;  %4975 = vmatprep.mubr.msk.f32.mxu1 %vm5403_vm0, %v5404_v4 }
 0xf77   :  { %4983 = vmatprep.subr.mxu1 %v5404_v4 }
 0xf79   :  { %4976 = vmatmul.mubr.msk.f32.vlgmr.msra.gmra.mrb[30].mxu1 %vm749_vm6, %v3398_v28  ;;  %v3564_v32 = vpop.permute.xlu1 %3563 }
 0xf7a   :  { %4984 = vmatpush3.xpose.msk.msra.mxu1 %vm749_vm6, %v3566_v30  ;;  %4985 = vmatprep.mubr.msk.f32.mxu1 %vm5403_vm0, %v5404_v4 }
 0xf7b   :  { %4993 = vmatprep.subr.mxu1 %v5404_v4 }
 0xf7d   :  { %4986 = vmatmul.mubr.msk.f32.vlgmr.msra.gmra.mrb[32].mxu1 %vm749_vm6, %v3564_v32  ;;  %v3730_v29 = vpop.permute.xlu1 %3729 }
 0xf7e   :  { %4994 = vmatpush3.xpose.msk.msra.mxu1 %vm749_vm6, %v3732_v31  ;;  %4995 = vmatprep.mubr.msk.f32.mxu1 %vm5403_vm0, %v5404_v4 }
 0xf81   :  { %4996 = vmatmul.mubr.msk.f32.vlgmr.msra.gmra.mrb[34].mxu1 %vm749_vm6, %v3730_v29 }
0x1038   :  { %v2627_v36 = vpop.f32.mrb[28].mxu0 }
0x1039   :  { %v2631_v37 = vmul.f32 0.35355338, %v2627_v36  ;;  %v4927_v38 = vpop.f32.mrb[29].mxu0  ;;  %v2793_v41 = vpop.f32.mrb[22].mxu1 }
0x103a   :  { %v2797_v42 = vmul.f32 0.35355338, %v2793_v41  ;;  %v4937_v43 = vpop.f32.mrb[23].mxu1 }
0x103b   :  { %v2632_v44 = vsel %vm749_vm6, %v2631_v37, -inf }
0x103c   :  { %2633 = vmax.xlane.f32.xlu0 %v2632_v44  ;;  %v2798_v45 = vsel %vm749_vm6, %v2797_v42, -inf }
0x103d   :  { %2799 = vmax.xlane.f32.xlu1 %v2798_v45 }
0x1040   :  { %v2959_v46 = vpop.f32.mrb[24].mxu1 }
0x1041   :  { %v5979_v47 = vmul.f32 0.35355338, %v2959_v46  ;;  %v4947_v48 = vpop.f32.mrb[25].mxu1 }
0x1043   :  { %v2964_v49 = vsel %vm749_vm6, %v5979_v47, -inf }
0x1044   :  { %2965 = vmax.xlane.f32.xlu0 %v2964_v49  ;;  %v3125_v50 = vpop.f32.mrb[26].mxu1 }
0x1045   :  { %v3129_v53 = vmul.f32 0.35355338, %v3125_v50  ;;  %v4957_v54 = vpop.f32.mrb[27].mxu1 }
0x1047   :  { %v3130_v55 = vsel %vm749_vm6, %v3129_v53, -inf }
0x1048   :  { %3131 = vmax.xlane.f32.xlu0 %v3130_v55  ;;  %v3305_v56 = vpop.f32.mrb[28].mxu1 }
0x1049   :  { %v3309_v57 = vmul.f32 0.35355338, %v3305_v56  ;;  %v4967_v58 = vpop.f32.mrb[29].mxu1 }
0x104b   :  { %v3310_v59 = vsel %vm749_vm6, %v3309_v57, -inf }
0x104c   :  { %3311 = vmax.xlane.f32.xlu0 %v3310_v59  ;;  %v3471_v39 = vpop.f32.mrb[30].mxu1 }
0x104d   :  { %v3475_v60 = vmul.f32 0.35355338, %v3471_v39  ;;  %v4977_v61 = vpop.f32.mrb[31].mxu1 }
0x104f   :  { %v3476_v62 = vsel %vm749_vm6, %v3475_v60, -inf }
0x1050   :  { %3477 = vmax.xlane.f32.xlu1 %v3476_v62  ;;  %v3637_v63 = vpop.f32.mrb[32].mxu1 }
0x1051   :  { %v3641_v0 = vmul.f32 0.35355338, %v3637_v63  ;;  %v4987_v3 = vpop.f32.mrb[33].mxu1 }
0x1053   :  { %v3642_v5 = vsel %vm749_vm6, %v3641_v0, -inf }
0x1054   :  { %3643 = vmax.xlane.f32.xlu0 %v3642_v5  ;;  %v3803_v6 = vpop.f32.mrb[34].mxu1 }
0x1055   :  { %v4997_v7 = vpop.f32.mrb[35].mxu1  ;;  %v3807_v8 = vmul.f32 0.35355338, %v3803_v6 }
0x1057   :  { %v3808_v9 = vsel %vm749_vm6, %v3807_v8, -inf }
0x1061   :  { %2643 = vrot.lane.b32.xlu1 %v5906_v18, %s5412_s8 }
0x1085   :  { %3809 = vmax.xlane.f32.xlu1 %v3808_v9 }
0x1096   :  { %2975 = vrot.lane.b32.xlu1 %v5906_v18, %s5413_s14 }
0x109a   :  { %3141 = vrot.lane.b32.xlu1 %v5906_v18, %s5414_s19 }
0x109e   :  { %3321 = vrot.lane.b32.xlu1 %v5920_v33, %s5412_s8 }
0x10c9   :  { %v2634_v10 = vpop.xlane.xlu0 %2633 }
0x10ca   :  { %v2635_v12 = vsub.f32 %v2631_v37, %v2634_v10  ;;  %v2800_v34 = vpop.xlane.xlu1 %2799 }
0x10cb   :  { %v2801_v17 = vsub.f32 %v2797_v42, %v2800_v34 }
0x10cc   :  { %v2636_v40 = vmul.f32 1.442695, %v2635_v12 }
0x10cd   :  { %v2802_v35 = vmul.f32 1.442695, %v2801_v17 }
0x10ce   :  { %5300 = vpow2.f32 %v2636_v40 }
0x10cf   :  { %5302 = vpow2.f32 %v2802_v35 }
0x10d1   :  { %v2966_v19 = vpop.xlane.xlu0 %2965 }
0x10d2   :  { %v2967_v29 = vsub.f32 %v5979_v47, %v2966_v19 }
0x10d4   :  { %v2968_v37 = vmul.f32 1.442695, %v2967_v29 }
0x10d5   :  { %v3132_v20 = vpop.xlane.xlu0 %3131 }
0x10d6   :  { %v3133_v21 = vsub.f32 %v3129_v53, %v3132_v20 }
0x10d8   :  { %v5301_v22 = vpop.eup %5300  ;;  %v3134_v23 = vmul.f32 1.442695, %v3133_v21 }
0x10d9   :  { %v5996_v24 = vpop.eup %5302  ;;  %v2638_v25 = vsel %vm749_vm6, %v5301_v22, 0.0  ;;  %v3312_v36 = vpop.xlane.xlu0 %3311 }
0x10da   :  { %5304 = vpow2.f32 %v3134_v23  ;;  %2639 = vadd.xlane.f32.xlu0 %v2638_v25  ;;  %v2804_v26 = vsel %vm749_vm6, %v5996_v24, 0.0  ;;  %v3313_v38 = vsub.f32 %v3309_v57, %v3312_v36 }
0x10db   :  { %2805 = vadd.xlane.f32.xlu1 %v2804_v26  ;;  %5306 = vpow2.f32 %v2968_v37 }
0x10dc   :  { %v3314_v42 = vmul.f32 1.442695, %v3313_v38 }
0x10dd   :  { %v3478_v28 = vpop.xlane.xlu1 %3477 }
0x10de   :  { %5308 = vpow2.f32 %v3314_v42  ;;  %v3479_v44 = vsub.f32 %v3475_v60, %v3478_v28  ;;  %v2453_v42 = vld [vmem:[%s6157_s30 + $0x20] sm:$0xff] }
0x10e0   :  { %v3480_v46 = vmul.f32 1.442695, %v3479_v44 }
0x10e1   :  { %v2644_v30 = vpop.permute.xlu1 %2643  ;;  %v3644_v41 = vpop.xlane.xlu0 %3643 }
0x10e2   :  { %4929 = vmatpush3.msra.mxu0 %v2644_v30  ;;  %v3645_v43 = vsub.f32 %v3641_v0, %v3644_v41 }
0x10e3   :  { %4938 = vmatprep.subr.mxu0 %v5404_v4 }
0x10e4   :  { %v6002_v32 = vpop.eup %5304  ;;  %v3646_v45 = vmul.f32 1.442695, %v3645_v43  ;;  %v2454_v43 = vld [vmem:[%s6157_s30 + $0x28] sm:$0xff] }
0x10e5   :  { %v3136_v31 = vsel %vm749_vm6, %v6002_v32, 0.0  ;;  %v5307_v48 = vpop.eup %5306 }
0x10e6   :  { %3137 = vadd.xlane.f32.xlu1 %v3136_v31  ;;  %5310 = vpow2.f32 %v3646_v45  ;;  %v5141_v45 = vpack.c.bf16 %v2454_v43, %v2453_v42 }
0x10e7   :  { %5312 = vpow2.f32 %v3480_v46 }
0x10e8   :  { %v5309_v49 = vpop.eup %5308  ;;  %5142 = vmatprep.subr.bf16.mxu1 %v5141_v45 }
0x10e9   :  { %v3316_v47 = vsel %vm749_vm6, %v5309_v49, 0.0  ;;  %5144 = vmatpush3.bf16.msra.mxu1 %v5141_v45 }
0x10f0   :  { %2809 = vrot.lane.b32.xlu0 %v5906_v18, %s5415_s24  ;;  %v2970_v18 = vsel %vm749_vm6, %v5307_v48, 0.0  ;;  %v6013_v53 = vpop.eup %5310 }
0x10f1   :  { %v3648_v56 = vsel %vm749_vm6, %v6013_v53, 0.0  ;;  %v5313_v57 = vpop.eup %5312 }
0x10f2   :  { %v3482_v58 = vsel %vm749_vm6, %v5313_v57, 0.0 }
0x10f7   :  { %3487 = vrot.lane.b32.xlu1 %v5920_v33, %s5415_s24 }
0x110f   :  { %2971 = vadd.xlane.f32.xlu0 %v2970_v18 }
0x1112   :  { %v3810_v50 = vpop.xlane.xlu1 %3809 }
0x1113   :  { %v3811_v54 = vsub.f32 %v3807_v8, %v3810_v50  ;;  %3317 = vadd.xlane.f32.xlu0 %v3316_v47 }
0x1115   :  { %v3812_v55 = vmul.f32 1.442695, %v3811_v54 }
0x1116   :  { %v2976_v60 = vpop.permute.xlu1 %2975 }
0x1117   :  { %5314 = vpow2.f32 %v3812_v55  ;;  %3649 = vadd.xlane.f32.xlu0 %v3648_v56 }
0x111a   :  { %v3142_v61 = vpop.permute.xlu1 %3141 }
0x111b   :  { %3483 = vadd.xlane.f32.xlu1 %v3482_v58 }
0x111e   :  { %v3322_v62 = vpop.permute.xlu1 %3321 }
0x1121   :  { %v6018_v59 = vpop.eup %5314 }
0x1122   :  { %v3814_v39 = vsel %vm749_vm6, %v6018_v59, 0.0 }
0x1123   :  { %3815 = vadd.xlane.f32.xlu0 %v3814_v39 }
0x112c   :  { %3819 = vrot.lane.b32.xlu1 %v5920_v33, %s5414_s19 }
0x1139   :  { %3653 = vrot.lane.b32.xlu0 %v5920_v33, %s5413_s14 }
0x1167   :  { %v2640_v63 = vpop.xlane.xlu0 %2639 }
0x1168   :  { %5316 = vrcp.f32 %v2640_v63  ;;  %v2806_v0 = vpop.xlane.xlu1 %2805 }
0x1169   :  { %5318 = vrcp.f32 %v2806_v0 }
0x116b   :  { %v2810_v7 = vpop.permute.xlu0 %2809 }
0x1172   :  { %v5317_v3 = vpop.eup %5316 }
0x1173   :  { %v2642_v5 = vmul.f32 %v5317_v3, %v5301_v22  ;;  %v5319_v6 = vpop.eup %5318  ;;  %v3138_v33 = vpop.xlane.xlu1 %3137 }
0x1174   :  { %v2808_v8 = vmul.f32 %v5319_v6, %v5996_v24 }
0x1175   :  { %4931 = vmatmul.mubr.msk.f32.vlgmr.msra.gmra.mrb[30].mxu0 %vm749_vm6, %v2642_v5 }
0x1176   :  { %4939 = vmatpush3.msra.mxu0 %v2810_v7  ;;  %4940 = vmatprep.mubr.msk.f32.mxu0 %vm5403_vm0, %v5404_v4 }
0x1177   :  { %4948 = vmatprep.subr.mxu0 %v5404_v4  ;;  %v3488_v12 = vpop.permute.xlu1 %3487 }
0x1179   :  { %4941 = vmatmul.mubr.msk.f32.vlgmr.msra.gmra.mrb[32].mxu0 %vm749_vm6, %v2808_v8 }
0x117a   :  { %4949 = vmatpush3.msra.mxu0 %v2976_v60  ;;  %4950 = vmatprep.mubr.msk.f32.mxu0 %vm5403_vm0, %v5404_v4 }
0x117b   :  { %4958 = vmatprep.subr.mxu0 %v5404_v4 }
0x119c   :  { %v2972_v9 = vpop.xlane.xlu0 %2971 }
0x119d   :  { %5320 = vrcp.f32 %v2972_v9  ;;  %v3913_v9 = vrot.slane %v5823_v15, %v5902_v16 }
0x119e   :  { %5322 = vrcp.f32 %v3138_v33 }
0x11a0   :  { %v3318_v10 = vpop.xlane.xlu0 %3317 }
0x11a1   :  { %5324 = vrcp.f32 %v3318_v10 }
0x11a4   :  { %v3650_v40 = vpop.xlane.xlu0 %3649 }
0x11a7   :  { %v5321_v34 = vpop.eup %5320 }
0x11a8   :  { %v2974_v17 = vmul.f32 %v5321_v34, %v5307_v48  ;;  %v3484_v35 = vpop.xlane.xlu1 %3483  ;;  %v5323_v19 = vpop.eup %5322  ;;  %v2456_v48 = vld [vmem:[%s6157_s30 + $0x38] sm:$0xff] }
0x11a9   :  { %5326 = vrcp.f32 %v3484_v35  ;;  %v3140_v20 = vmul.f32 %v5323_v19, %v6002_v32 }
0x11aa   :  { %4951 = vmatmul.mubr.msk.f32.vlgmr.msra.gmra.mrb[34].mxu0 %vm749_vm6, %v2974_v17  ;;  %5328 = vrcp.f32 %v3650_v40 }
0x11ab   :  { %4959 = vmatpush3.msra.mxu0 %v3142_v61  ;;  %4960 = vmatprep.mubr.msk.f32.mxu0 %vm5403_vm0, %v5404_v4  ;;  %v5325_v21 = vpop.eup %5324 }
0x11ac   :  { %4968 = vmatprep.subr.mxu0 %v5404_v4  ;;  %v3320_v22 = vmul.f32 %v5325_v21, %v5309_v49  ;;  %v3820_v32 = vpop.permute.xlu1 %3819 }
0x11ae   :  { %4961 = vmatmul.mubr.msk.f32.vlgmr.msra.gmra.mrb[36].mxu0 %vm749_vm6, %v3140_v20 }
0x11af   :  { %4969 = vmatpush3.msra.mxu0 %v3322_v62  ;;  %4970 = vmatprep.mubr.msk.f32.mxu0 %vm5403_vm0, %v5404_v4 }
0x11b0   :  { %v3816_v23 = vpop.xlane.xlu0 %3815  ;;  %4978 = vmatprep.subr.mxu0 %v5404_v4 }
0x11b1   :  { %5330 = vrcp.f32 %v3816_v23 }
0x11b2   :  { %4971 = vmatmul.mubr.msk.f32.vlgmr.msra.gmra.mrb[38].mxu0 %vm749_vm6, %v3320_v22 }
0x11b3   :  { %v5327_v24 = vpop.eup %5326  ;;  %4979 = vmatpush3.msra.mxu0 %v3488_v12  ;;  %4980 = vmatprep.mubr.msk.f32.mxu0 %vm5403_vm0, %v5404_v4 }
0x11b4   :  { %v3486_v25 = vmul.f32 %v5327_v24, %v5313_v57  ;;  %v3654_v26 = vpop.permute.xlu0 %3653  ;;  %4988 = vmatprep.subr.mxu0 %v5404_v4  ;;  %v5329_v28 = vpop.eup %5328 }
0x11b5   :  { %v3652_v30 = vmul.f32 %v5329_v28, %v6013_v53 }
0x11b6   :  { %4981 = vmatmul.mubr.msk.f32.vlgmr.msra.gmra.mrb[40].mxu0 %vm749_vm6, %v3486_v25 }
0x11b7   :  { %4989 = vmatpush3.msra.mxu0 %v3654_v26  ;;  %4990 = vmatprep.mubr.msk.f32.mxu0 %vm5403_vm0, %v5404_v4 }
0x11b8   :  { %4998 = vmatprep.subr.mxu0 %v5404_v4 }
0x11ba   :  { %4991 = vmatmul.mubr.msk.f32.vlgmr.msra.gmra.mrb[42].mxu0 %vm749_vm6, %v3652_v30  ;;  %v2457_v30 = vld [vmem:[%s6159_s23 + $0x20] sm:$0xff] }
0x11bb   :  { %v5331_v31 = vpop.eup %5330  ;;  %4999 = vmatpush3.msra.mxu0 %v3820_v32  ;;  %5000 = vmatprep.mubr.msk.f32.mxu0 %vm5403_vm0, %v5404_v4  ;;  %v2455_v4 = vld [vmem:[%s6157_s30 + $0x30] sm:$0xff]  ;;  %v2458_v32 = vld [vmem:[%s6159_s23 + $0x28] sm:$0xff] }
0x11bc   :  { %v3818_v29 = vmul.f32 %v5331_v31, %v6018_v59  ;;  %v5145_v49 = vpack.c.bf16 %v2456_v48, %v2455_v4  ;;  %v5149_v31 = vpack.c.bf16 %v2458_v32, %v2457_v30 }
0x11be   :  { %5001 = vmatmul.mubr.msk.f32.vlgmr.msra.gmra.mrb[44].mxu0 %vm749_vm6, %v3818_v29  ;;  %5146 = vmatprep.subr.bf16.mxu1 %v5145_v49  ;;  %v2459_v29 = vld [vmem:[%s6159_s23 + $0x30] sm:$0xff] }
0x11bf   :  { %5148 = vmatpush3.bf16.msra.mxu1 %v5145_v49  ;;  %5150 = vmatprep.subr.bf16.mxu0 %v5149_v31 }
0x11c0   :  { %5152 = vmatpush3.bf16.msra.mxu0 %v5149_v31 }
0x1248   :  { %v2715_v36 = vpop.f32.mrb[30].mxu0 }
0x1249   :  { %v4932_v37 = vpop.f32.mrb[31].mxu0 }
0x124c   :  { %v2881_v38 = vpop.f32.mrb[32].mxu0 }
0x124d   :  { %3218 = vrot.lane.b32.xlu0 %v2881_v38, %s5416_s15  ;;  %v4942_v41 = vpop.f32.mrb[33].mxu0 }
0x127d   :  { %v3047_v44 = vpop.f32.mrb[34].mxu0 }
0x127e   :  { %3222 = vrot.lane.b32.xlu1 %v3047_v44, %s5417_s16  ;;  %v4952_v46 = vpop.f32.mrb[35].mxu0 }
0x127f   :  { %v4026_v46 = vrot.slane %v5838_v51, %v5902_v16  ;;  %v2461_v51 = vld [vmem:[%s6162_s1 + $0x40] sm:$0xff] }
0x1281   :  { %v3213_v18 = vpop.f32.mrb[36].mxu0 }
0x1282   :  { %3226 = vrot.lane.b32.xlu1 %v3213_v18, %s5418_s18  ;;  %v4962_v50 = vpop.f32.mrb[37].mxu0  ;;  %v4032_v18 = vrot.slane %v5841_v52, %v5902_v16  ;;  %v2463_v52 = vld [vmem:[%s6162_s1 + $0x50] sm:$0xff] }
0x1285   :  { %v3393_v47 = vpop.f32.mrb[38].mxu0 }
0x1286   :  { %v4972_v53 = vpop.f32.mrb[39].mxu0 }
0x1289   :  { %v3559_v54 = vpop.f32.mrb[40].mxu0 }
0x128a   :  { %3896 = vrot.lane.b32.xlu0 %v3559_v54, %s5416_s15  ;;  %v4982_v55 = vpop.f32.mrb[41].mxu0 }
0x128d   :  { %v3725_v56 = vpop.f32.mrb[42].mxu0 }
0x128e   :  { %3900 = vrot.lane.b32.xlu0 %v3725_v56, %s5417_s16  ;;  %v4992_v57 = vpop.f32.mrb[43].mxu0  ;;  %v2462_v56 = vld [vmem:[%s6162_s1 + $0x48] sm:$0xff] }
0x128f   :  { %v5157_v57 = vpack.c.bf16 %v2462_v56, %v2461_v51 }
0x1291   :  { %v3891_v58 = vpop.f32.mrb[44].mxu0  ;;  %5158 = vmatprep.subr.bf16.mxu1 %v5157_v57 }
0x1292   :  { %3904 = vrot.lane.b32.xlu1 %v3891_v58, %s5418_s18  ;;  %v5002_v59 = vpop.f32.mrb[45].mxu0  ;;  %v2464_v58 = vld [vmem:[%s6162_s1 + $0x58] sm:$0xff] }
0x1293   :  { %v5161_v59 = vpack.c.bf16 %v2464_v58, %v2463_v52 }
0x12bf   :  { %v3219_v39 = vpop.permute.xlu0 %3218 }
0x12c0   :  { %v3229_v61 = vsel %vm749_vm6, %v2715_v36, %v3219_v39  ;;  %v2460_v36 = vld [vmem:[%s6159_s23 + $0x38] sm:$0xff]  ;;  %v2465_v39 = vld [vmem:[%s6162_s1 + $0x60] sm:$0xff] }
0x12c1   :  { %v5153_v37 = vpack.c.bf16 %v2460_v36, %v2459_v29 }
0x12c3   :  { %5154 = vmatprep.subr.bf16.mxu0 %v5153_v37 }
0x12c4   :  { %5156 = vmatpush3.bf16.msra.mxu0 %v5153_v37 }
0x12f0   :  { %v3223_v60 = vpop.permute.xlu1 %3222 }
0x12f1   :  { %v3230_v62 = vsel %vm137_vm1, %v3229_v61, %v3223_v60  ;;  %v2466_v60 = vld [vmem:[%s6162_s1 + $0x68] sm:$0xff] }
0x12f2   :  { %v5165_v61 = vpack.c.bf16 %v2466_v60, %v2465_v39  ;;  %v4349_v60 = vld [vmem:[%s5569_s27] sm:$0xff] }
0x12f4   :  { %v3227_v63 = vpop.permute.xlu1 %3226 }
0x12f5   :  { %v3231_v0 = vsel %vm1424_vm7, %v3230_v62, %v3227_v63  ;;  %v2467_v62 = vld [vmem:[%s6162_s1 + $0x70] sm:$0xff]  ;;  %v2468_v63 = vld [vmem:[%s6162_s1 + $0x78] sm:$0xff] }
0x12f6   :  { %5011 = vmatprep.mubr.msk.f32.mxu1 %vm412_vm3, %v3231_v0  ;;  %v5169_v0 = vpack.c.bf16 %v2468_v63, %v2467_v62  ;;  %v4352_v63 = vld [vmem:[%s5569_s27 + $0x18] sm:$0xff] }
0x12fc   :  { %v3897_v3 = vpop.permute.xlu0 %3896 }
0x12fd   :  { %v3907_v6 = vsel %vm749_vm6, %v3393_v47, %v3897_v3  ;;  %v4038_v3 = vrot.slane %v5859_v11, %v5902_v16  ;;  %v4133_v11 = vrot.slane %v5868_v27, %v5902_v16 }
0x1300   :  { %v3901_v5 = vpop.permute.xlu0 %3900 }
0x1301   :  { %v3908_v7 = vsel %vm137_vm1, %v3907_v6, %v3901_v5 }
0x1304   :  { %v3905_v8 = vpop.permute.xlu1 %3904 }
0x1305   :  { %v3909_v33 = vsel %vm1424_vm7, %v3908_v7, %v3905_v8 }
0x1306   :  { %5012 = vmatmul.mubr.msk.f32.vlgmr.msra.gmra.mrb[36].mxu1 %vm412_vm3, %v3909_v33 }
0x1307   :  { %5160 = vmatpush3.bf16.msra.mxu1 %v5157_v57  ;;  %v4252_v57 = vrot.slane %v5885_v2, %v5902_v16  ;;  %v4568_v2 = vld [vmem:[%s5564_s20] ss:$0 sm:$0xff] }
0x1308   :  { %5162 = vmatprep.subr.bf16.mxu1 %v5161_v59 }
0x130b   :  { %5164 = vmatpush3.bf16.msra.mxu1 %v5161_v59 }
0x130c   :  { %5166 = vmatprep.subr.bf16.mxu1 %v5165_v61 }
0x130f   :  { %5168 = vmatpush3.bf16.msra.mxu1 %v5165_v61  ;;  %v4350_v61 = vld [vmem:[%s5569_s27 + $0x8] sm:$0xff] }
0x1310   :  { %5170 = vmatprep.subr.bf16.mxu1 %v5169_v0  ;;  %v5181_v62 = vpack.c.bf16 %v4350_v61, %v4349_v60 }
0x1313   :  { %5172 = vmatpush3.bf16.msra.mxu1 %v5169_v0 }
0x13d9   :  { %v5013_v10 = vpop.f32.mrb[36].mxu1 }
0x13da   :  { %v3992_v12 = vadd.f32 %v5013_v10, %v3913_v9  ;;  %v3986_v34 = vpop.f32.mrb[37].mxu1 }
0x13db   :  { %v3987_v17 = vadd.f32 %v3986_v34, %v3913_v9 }
0x13dc   :  { %v3996_v40 = vadd.f32 %v3992_v12, %v5893_v14 }
0x13dd   :  { %v3995_v35 = vadd.f32 %v3987_v17, %v5891_v13 }
0x13de   :  { %v4000_v19 = vsel %vm412_vm3, %v3996_v40, 0.0 }
0x13df   :  { %4001 = vadd.xlane.f32.xlu1 %v4000_v19  ;;  %v3997_v20 = vsel %vm412_vm3, %v3995_v35, 0.0 }
0x13e0   :  { %3998 = vadd.xlane.f32.xlu0 %v3997_v20 }
0x146c   :  { %v4002_v21 = vpop.xlane.xlu1 %4001 }
0x146d   :  { %v4004_v22 = vmul.f32 0.03125, %v4002_v21  ;;  %v3999_v15 = vpop.xlane.xlu0 %3998 }
0x146e   :  { %v4003_v23 = vmul.f32 0.03125, %v3999_v15 }
0x146f   :  { %v4006_v24 = vsub.f32 %v3996_v40, %v4004_v22 }
0x1470   :  { %v4005_v25 = vsub.f32 %v3995_v35, %v4003_v23 }
0x1471   :  { %v4008_v13 = vmul.f32 %v4006_v24, %v4006_v24 }
0x1472   :  { %v4007_v26 = vmul.f32 %v4005_v25, %v4005_v25 }
0x1473   :  { %v4012_v28 = vsel %vm412_vm3, %v4008_v13, 0.0 }
0x1474   :  { %v4009_v14 = vsel %vm412_vm3, %v4007_v26, 0.0 }
0x1475   :  { %4010 = vadd.xlane.f32.xlu0 %v4009_v14 }
0x1479   :  { %4013 = vadd.xlane.f32.xlu0 %v4012_v28 }
0x1502   :  { %v4011_v38 = vpop.xlane.xlu0 %4010 }
0x1503   :  { %v4015_v41 = vmul.f32 0.03125, %v4011_v38 }
0x1505   :  { %v4017_v42 = vadd.f32 1e-12, %v4015_v41  ;;  %v4255_v41 = vld [vmem:[%s6167_s12] sm:$0xff] }
0x1506   :  { %v4014_v43 = vpop.xlane.xlu0 %4013 }
0x1507   :  { %5332 = vrsqrt.f32 %v4017_v42  ;;  %v4016_v44 = vmul.f32 0.03125, %v4014_v43  ;;  %v4256_v42 = vld [vmem:[%s6167_s12 + $0x8] sm:$0xff] }
0x1508   :  { %v5173_v43 = vpack.c.bf16 %v4256_v42, %v4255_v41 }
0x1509   :  { %v4018_v45 = vadd.f32 1e-12, %v4016_v44  ;;  %v4257_v44 = vld [vmem:[%s6167_s12 + $0x10] sm:$0xff] }
0x150a   :  { %5174 = vmatprep.subr.bf16.mxu0 %v5173_v43 }
0x150b   :  { %5334 = vrsqrt.f32 %v4018_v45  ;;  %v4258_v45 = vld [vmem:[%s6167_s12 + $0x18] sm:$0xff] }
0x1511   :  { %v5333_v4 = vpop.eup %5332 }
0x1512   :  { %v4021_v48 = vmul.f32 %v5333_v4, %v4005_v25 }
0x1514   :  { %v4027_v49 = vmul.f32 %v4026_v46, %v4021_v48 }
0x1515   :  { %v5335_v50 = vpop.eup %5334 }
0x1516   :  { %v4022_v47 = vmul.f32 %v5335_v50, %v4006_v24  ;;  %v4033_v53 = vadd.f32 %v4032_v18, %v4027_v49 }
0x1518   :  { %v4028_v54 = vmul.f32 %v4026_v46, %v4022_v47  ;;  %5022 = vmatprep.mubr.msk.f32.mxu0 %vm412_vm3, %v4033_v53  ;;  %v5177_v46 = vpack.c.bf16 %v4258_v45, %v4257_v44 }
0x151a   :  { %v4034_v55 = vadd.f32 %v4032_v18, %v4028_v54 }
0x151c   :  { %5023 = vmatmul.mubr.msk.f32.vlgmr.msra.gmra.mrb[46].mxu0 %vm412_vm3, %v4034_v55 }
0x151d   :  { %5176 = vmatpush3.bf16.msra.mxu0 %v5173_v43 }
0x151e   :  { %5178 = vmatprep.subr.bf16.mxu0 %v5177_v46 }
0x1521   :  { %5180 = vmatpush3.bf16.msra.mxu0 %v5177_v46 }
0x1522   :  { %5182 = vmatprep.subr.bf16.mxu0 %v5181_v62 }
0x15ef   :  { %v5024_v5 = vpop.f32.mrb[46].mxu0 }
0x15f0   :  { %v4117_v6 = vadd.f32 %v5024_v5, %v4038_v3  ;;  %v4111_v7 = vpop.f32.mrb[47].mxu0 }
0x15f1   :  { %v4112_v8 = vadd.f32 %v4111_v7, %v4038_v3 }
0x15f2   :  { %v4123_v33 = vmul.f32 0.70710677, %v4117_v6  ;;  %v4121_v35 = vmul.f32 0.5, %v4117_v6 }
0x15f3   :  { %v4122_v9 = vmul.f32 0.70710677, %v4112_v8  ;;  %v4120_v17 = vmul.f32 0.5, %v4112_v8 }
0x15f4   :  { %5336 = verf.f32 %v4123_v33  ;;  %v4571_v33 = vld [vmem:[%s5574_s4] ss:$0 sm:$0xff] }
0x15f5   :  { %5338 = verf.f32 %v4122_v9 }
0x15fe   :  { %v5337_v10 = vpop.eup %5336 }
0x15ff   :  { %v5339_v12 = vpop.eup %5338  ;;  %v4127_v34 = vadd.f32 1.0, %v5337_v10 }
0x1600   :  { %v4126_v40 = vadd.f32 1.0, %v5339_v12 }
0x1601   :  { %v4129_v20 = vmul.f32 %v4127_v34, %v4121_v35 }
0x1602   :  { %v4128_v19 = vmul.f32 %v4126_v40, %v4120_v17 }
0x1604   :  { %5041 = vmatprep.mubr.msk.f32.mxu1 %vm233_vm2, %v4128_v19 }
0x1605   :  { %5042 = vmatmul.mubr.msk.f32.vlgmr.msra.gmra.mrb[38].mxu1 %vm233_vm2, %v4129_v20 }
0x16d8   :  { %v5043_v21 = vpop.f32.mrb[38].mxu1 }
0x16d9   :  { %v4212_v22 = vadd.f32 %v5043_v21, %v4133_v11  ;;  %v4206_v15 = vpop.f32.mrb[39].mxu1 }
0x16da   :  { %v4207_v23 = vadd.f32 %v4206_v15, %v4133_v11 }
0x16db   :  { %v4216_v24 = vadd.f32 %v4212_v22, %v4034_v55 }
0x16dc   :  { %v4215_v25 = vadd.f32 %v4207_v23, %v4033_v53  ;;  %v4246_v53 = vrot.slane %v5882_v1, %v5902_v16  ;;  %v4351_v1 = vld [vmem:[%s5569_s27 + $0x10] sm:$0xff]  ;;  %s5419_s27 = smov [#allocation2]  }
0x16dd   :  { %v4220_v26 = vsel %vm412_vm3, %v4216_v24, 0.0  ;;  %v5185_v0 = vpack.c.bf16 %v4352_v63, %v4351_v1  ;;  %s4448_s0 = sshll.u32 %s5419_s27, 4  ;;  %s4449_s0 = int_to_ptr.vmem [resolvable:$true] %s4448_s0 }
0x16de   :  { %4221 = vadd.xlane.f32.xlu1 %v4220_v26  ;;  %v4217_v14 = vsel %vm412_vm3, %v4215_v25, 0.0  ;;  %s5348_s20 = scalar_lea.vmem %s4449_s0, 256  ;;  %p5353_p1 = scmp.lt.s32.totalorder %s4449_s0, %s4449_s0 }
0x16df   :  { %4218 = vadd.xlane.f32.xlu0 %v4217_v14  ;;  %p5349_p0 = scmp.ne.s32.totalorder %s4449_s0, %s5348_s20  ;;  %p5354_p2 = scmp.lt.s32.totalorder %s5348_s20, %s5348_s20 }
0x16e1   :  { %p5355_p3 = por %p5354_p2, %p5353_p1 }
0x16e3   :  { %p5356_p4 = pnand %p5355_p3, %p5349_p0 }
0x176b   :  { %v4222_v13 = vpop.xlane.xlu1 %4221 }
0x176c   :  { %v4224_v28 = vmul.f32 0.03125, %v4222_v13  ;;  %v4219_v30 = vpop.xlane.xlu0 %4218 }
0x176d   :  { %v4223_v27 = vmul.f32 0.03125, %v4219_v30 }
0x176e   :  { %v4226_v32 = vsub.f32 %v4216_v24, %v4224_v28 }
0x176f   :  { %v4225_v31 = vsub.f32 %v4215_v25, %v4223_v27 }
0x1770   :  { %v4228_v29 = vmul.f32 %v4226_v32, %v4226_v32 }
0x1771   :  { %v4227_v36 = vmul.f32 %v4225_v31, %v4225_v31 }
0x1772   :  { %v4232_v37 = vsel %vm412_vm3, %v4228_v29, 0.0 }
0x1773   :  { %4233 = vadd.xlane.f32.xlu1 %v4232_v37  ;;  %v4229_v38 = vsel %vm412_vm3, %v4227_v36, 0.0 }
0x1774   :  { %4230 = vadd.xlane.f32.xlu0 %v4229_v38 }
0x1800   :  { %v4234_v4 = vpop.xlane.xlu1 %4233 }
0x1801   :  { %v4236_v48 = vmul.f32 0.03125, %v4234_v4  ;;  %v4231_v18 = vpop.xlane.xlu0 %4230 }
0x1802   :  { %v4235_v49 = vmul.f32 0.03125, %v4231_v18 }
0x1803   :  { %v4238_v50 = vadd.f32 1e-12, %v4236_v48 }
0x1804   :  { %v4237_v47 = vadd.f32 1e-12, %v4235_v49 }
0x1805   :  { %5340 = vrsqrt.f32 %v4238_v50 }
0x1806   :  { %5342 = vrsqrt.f32 %v4237_v47 }
0x180f   :  { %v5341_v54 = vpop.eup %5340 }
0x1810   :  { %v5343_v55 = vpop.eup %5342  ;;  %v4242_v51 = vmul.f32 %v5341_v54, %v4226_v32 }
0x1811   :  { %v4241_v56 = vmul.f32 %v5343_v55, %v4225_v31 }
0x1812   :  { %v4248_v52 = vmul.f32 %v4246_v53, %v4242_v51 }
0x1813   :  { %v4247_v58 = vmul.f32 %v4246_v53, %v4241_v56 }
0x1814   :  { %v4254_v39 = vadd.f32 %v4252_v57, %v4248_v52 }
0x1815   :  { %v4253_v59 = vadd.f32 %v4252_v57, %v4247_v58 }
0x1817   :  { %5052 = vmatprep.mubr.msk.f32.mxu0 %vm412_vm3, %v4253_v59 }
0x1818   :  { %5053 = vmatmul.mubr.msk.f32.vlgmr.msra.gmra.mrb[48].mxu0 %vm412_vm3, %v4254_v39 }
0x1819   :  { %5184 = vmatpush3.bf16.msra.mxu0 %v5181_v62 }
0x181a   :  { %5186 = vmatprep.subr.bf16.mxu0 %v5185_v0 }
0x181d   :  { %5188 = vmatpush3.bf16.msra.mxu0 %v5185_v0 }
0x18eb   :  { %v5054_v16 = vpop.f32.mrb[48].mxu0 }
0x18ec   :  { %v4344_v3 = vadd.f32 %v5054_v16, %v4568_v2  ;;  %v4338_v5 = vpop.f32.mrb[49].mxu0 }
0x18ed   :  { %v4339_v6 = vadd.f32 %v4568_v2, %v4338_v5 }
0x18ef   :  { %5344 = vtanh.f32 %v4339_v6 }
0x18f0   :  { %5346 = vtanh.f32 %v4344_v3 }
0x18f9   :  { %v5345_v7 = vpop.eup %5344 }
0x18fa   :  { %v5347_v8 = vpop.eup %5346  ;;  %5063 = vmatprep.mubr.msk.f32.mxu0 %vm412_vm3, %v5345_v7 }
0x18fb   :  { %5064 = vmatmul.mubr.msk.f32.vlgmr.msra.gmra.mrb[50].mxu0 %vm412_vm3, %v5347_v8 }
0x19ce   :  { %v5065_v9 = vpop.f32.mrb[50].mxu0 }
0x19cf   :  { %v4438_v10 = vadd.f32 %v5065_v9, %v4571_v33  ;;  %v4432_v12 = vpop.f32.mrb[51].mxu0 }
0x19d0   :  { %v4433_v34 = vadd.f32 %v4571_v33, %v4432_v12 }
0x19d1   :  { %4442 = vst.msk [vmem:[#allocation2 + $0x8] sm:$0xff] %vm137_vm1, %v4438_v10 }
0x19d2   :  { %4441 = vst.msk [vmem:[#allocation2] sm:$0xff] %vm137_vm1, %v4433_v34 }
0x19d3   :  { %5359 = shalt.err (!%p5356_p4)
}
0x19d4   :  { %s5360_s4 = scalar_lea.hbm %s5579_s6, 256 }
0x19d5   :  { %p5361_p5 = scmp.ne.s32.totalorder %s5579_s6, %s5360_s4  ;;  %p5364_p6 = scmp.lt.u32.totalorder %s5360_s4, %s5579_s6 }
0x19d7   :  { %p5366_p7 = pnand %p5364_p6, %p5361_p5 }
0x19d9   :  { %5369 = shalt.err (!%p5366_p7)
}
0x19da   :  { %s5420_s5 = smov 128  }
0x19db   :  { %4454 = dma.vmem_to_hbm [thread:$0]  %s4449_s0, 256, %s5579_s6, [#allocation3], %s5420_s5, %s5420_s5, %s5416_s15  }
0x19dc   :  { %5370 = dma.done.wait [#allocation3], 256  }
0x19dd   :  { %5371 = vsyncadd [#allocation3], 4294967040 }
0x19de   :  { %4458 = vsyncpa [#allocation3], 1 }

</bundles_post_ra>
